<compile_context>
chip_gen: v6e
topology: v6e:2x2x1
jax: 0.10.0
libtpu: 0.0.40
codegen_flags: <defaults>
</compile_context>

<pallas_src>
import functools

import jax
import jax.numpy as jnp
from jax.experimental import pallas as pl
from jax.experimental.pallas import tpu as pltpu


MAX_BATCH_TILE = 1024                 # ~0.4 GFLOP/tile; live activations < 4 MiB
VMEM_LIMIT_BYTES = 32 * 1024 * 1024   # above v5e's 16 MiB scoped default, safe on v7x


def _round_up(x, m):
    return -(-x // m) * m


# ----------------------------- Fused Pallas kernel --------------------------- #

def _fused_shared_bottom_kernel(x_ref, *refs, num_bottom, num_tower_hidden,
                                num_tasks):
    """Whole SharedBottom forward for one batch tile.

    Ref order:
      x_ref                                   (Bt, Dpad)      bf16
      bottom:   [W (d_in,d_out) bf16, b (1,d_out) f32] * num_bottom
      per task: [W bf16, b f32] * num_tower_hidden, head_w (1,d) f32, head_b (1,1) f32
      output:   (Bt, num_tasks) f32   (all task predictions packed along lanes)
    """
    n_in = 2 * num_bottom + num_tasks * (2 * num_tower_hidden + 2)
    in_refs = refs[:n_in]
    out_ref = refs[n_in]

    def dense_relu(h, w_ref, b_ref):
        # MXU matmul in bf16 with f32 accumulation; folded-BN bias + ReLU on VPU
        # in f32, then carry the activation in bf16 between layers.
        y = jnp.dot(h, w_ref[...], preferred_element_type=jnp.float32)
        y = jnp.maximum(y + b_ref[...], 0.0)
        return y.astype(jnp.bfloat16)

    idx = 0
    h = x_ref[...]                                    # (Bt, Dpad) bf16
    for _ in range(num_bottom):
        h = dense_relu(h, in_refs[idx], in_refs[idx + 1])
        idx += 2
    bottom_out = h                                    # (Bt, 128) bf16, stays on-chip

    # TODO(synk): for num_tasks > 1, stack the first tower layer's weights along N
    # (one wide matmul for all tasks) — a no-op for the single-task config here.
    logits_list = []
    for _ in range(num_tasks):
        ht = bottom_out
        for _ in range(num_tower_hidden):
            ht = dense_relu(ht, in_refs[idx], in_refs[idx + 1])
            idx += 2
        head_w = in_refs[idx][...]                    # (1, d) f32
        head_b = in_refs[idx + 1][...]                # (1, 1) f32
        idx += 2
        # Linear(d -> 1) as VPU multiply + XLU lane reduce (no N=1 MXU matmul).
        logits_list.append(jnp.sum(ht * head_w, axis=-1, keepdims=True) + head_b)

    logits = (jnp.concatenate(logits_list, axis=-1)
              if num_tasks > 1 else logits_list[0])   # (Bt, num_tasks) f32
    out_ref[...] = jax.nn.sigmoid(logits).astype(out_ref.dtype)   # EUP


def shared_bottom_fused(feature_emb, bottom_params, tower_params):
    """One pallas_call for the whole network, gridded over (large) batch tiles.

    Returns a single (B, num_tasks) f32 array of task predictions."""
    B, d_in = feature_emb.shape
    num_tasks = len(tower_params)
    num_bottom = len(bottom_params)
    num_tower_hidden = len(tower_params[0]["hidden"])

    # Large batch tile; pad the batch UP to a multiple of the tile (never shrink
    # the tile — short grid, big tiles).
    b_tile = min(MAX_BATCH_TILE, _round_up(B, 8))
    Bp = _round_up(B, b_tile)
    if Bp != B:
        feature_emb = jnp.pad(feature_emb, ((0, Bp - B), (0, 0)))
    grid = (Bp // b_tile,)

    flat_inputs = [feature_emb]
    for w, b in bottom_params:
        flat_inputs += [w, b]
    for tw in tower_params:
        for w, b in tw["hidden"]:
            flat_inputs += [w, b]
        flat_inputs += [tw["head_w"], tw["head_b"]]

    kernel = functools.partial(_fused_shared_bottom_kernel,
                               num_bottom=num_bottom,
                               num_tower_hidden=num_tower_hidden,
                               num_tasks=num_tasks)

    out_shape = jax.ShapeDtypeStruct((Bp, num_tasks), jnp.float32)
    out_specs = pl.BlockSpec((b_tile, num_tasks), lambda i: (i, 0))

    def build_call(single_buffer_weights):
        def weight_spec(arr):
            nd = arr.ndim
            idx_map = lambda i, _nd=nd: (0,) * _nd       # block index never changes
            if single_buffer_weights:
                return pl.BlockSpec(arr.shape, idx_map,
                                    pipeline_mode=pl.Buffered(1))
            return pl.BlockSpec(arr.shape, idx_map)

        in_specs = [pl.BlockSpec((b_tile, d_in), lambda i: (i, 0))]
        for arr in flat_inputs[1:]:
            in_specs.append(weight_spec(arr))

        return pl.pallas_call(
            kernel,
            grid=grid,
            in_specs=in_specs,
            out_specs=out_specs,
            out_shape=out_shape,
            compiler_params=pltpu.CompilerParams(
                dimension_semantics=("parallel",),       # shards batch across TCs
                vmem_limit_bytes=VMEM_LIMIT_BYTES),
        )

    try:
        out = build_call(single_buffer_weights=True)(*flat_inputs)
    except Exception:
        # pl.Buffered(1) not supported on this jax/libtpu — fall back to the
        # default double-buffered weight specs (costs ~0.4 MiB VMEM, nothing else).
        out = build_call(single_buffer_weights=False)(*flat_inputs)

    if Bp != B:
        out = out[:B]
    return out


# ----------------------------- Parameter setup ------------------------------- #

def xavier_normal(key, fan_in, fan_out):
    std = jnp.sqrt(2.0 / (fan_in + fan_out))
    return jax.random.normal(key, (fan_in, fan_out), dtype=jnp.float32) * std


def make_mlp_params(key, input_size, hidden_sizes, output_size=None, bn_eps=1e-5,
                    pad_input_to=None):
    """Hidden layers: Linear + eval-mode BatchNorm folded into (W, b); ReLU applied
    in-kernel. If pad_input_to is set, the FIRST layer's weight rows are zero-padded
    so it can consume lane-padded inputs. Output layer (towers only): Linear(1) as a
    (1, d) head vector + scalar bias, Sigmoid applied in-kernel.
    Weights bf16, biases (1, D) f32."""
    hidden = []
    d_in = input_size
    first = True
    for h in hidden_sizes:
        key, k = jax.random.split(key)
        w = xavier_normal(k, d_in, h)
        b = jnp.zeros((h,), jnp.float32)
        # Eval-mode BatchNorm1d (torch defaults: gamma=1, beta=0, mean=0, var=1).
        gamma = jnp.ones((h,), jnp.float32)
        beta = jnp.zeros((h,), jnp.float32)
        running_mean = jnp.zeros((h,), jnp.float32)
        running_var = jnp.ones((h,), jnp.float32)
        scale = gamma / jnp.sqrt(running_var + bn_eps)
        shift = beta - running_mean * scale
        w_folded = w * scale[None, :]
        b_folded = (b * scale + shift).reshape(1, -1).astype(jnp.float32)
        if first and pad_input_to is not None and pad_input_to > d_in:
            w_folded = jnp.pad(w_folded, ((0, pad_input_to - d_in), (0, 0)))
        first = False
        hidden.append((w_folded.astype(jnp.bfloat16), b_folded))
        d_in = h

    if output_size is None:
        return hidden

    assert output_size == 1, "tower heads use the VPU-reduction path (output_size=1)"
    key, k = jax.random.split(key)
    head_w = xavier_normal(k, d_in, output_size).reshape(1, d_in).astype(jnp.float32)
    head_b = jnp.zeros((1, 1), jnp.float32)
    return dict(hidden=hidden, head_w=head_w, head_b=head_b)


# ----------------------------- SharedBottom forward -------------------------- #

def shared_bottom_forward(indices, stacked_table, field_offsets, bottom_params,
                          tower_params, targets, d_in_padded):
    """indices: (B, num_fields) int32. Embedding lookup = one offset gather on a
    bf16 stacked table + reshape (matches per-field lookup + concat(dim=-1)), with
    the feature dim zero-padded to a lane multiple; everything else runs inside the
    single fused Pallas kernel."""
    B, num_fields = indices.shape
    emb_dim = stacked_table.shape[1]
    d_in = num_fields * emb_dim
    flat_idx = (indices + field_offsets[None, :]).reshape(-1)
    feature_emb = jnp.take(stacked_table, flat_idx, axis=0).reshape(B, d_in)
    if d_in_padded > d_in:
        feature_emb = jnp.pad(feature_emb, ((0, 0), (0, d_in_padded - d_in)))
    feature_emb = feature_emb.astype(jnp.bfloat16)

    preds = shared_bottom_fused(feature_emb, bottom_params, tower_params)
    return {f"{targets[i]}_pred": preds[:, i:i + 1]
            for i in range(len(tower_params))}


# ----------------------------- Main ------------------------------------------ #

if __name__ == "__main__":
    key = jax.random.PRNGKey(0)

    # Synthetic feature_map: 4 non-meta categorical fields, 1 task.
    B = 8
    embedding_dim = 10
    vocab_sizes = {"user_id": 100, "item_id": 50, "category": 30, "device": 20}
    targets = ["click"]
    num_tasks = 1

    bottom_hidden_units = [512, 256, 128]
    tower_hidden_units = [128, 64]
    tower_output_sizes = [1]

    # Stacked embedding table (nn.Embedding default init ~ N(0,1)) kept in bf16,
    # plus per-field offsets for the single gather.
    sizes = list(vocab_sizes.values())
    offsets, acc = [], 0
    for s in sizes:
        offsets.append(acc)
        acc += s
    field_offsets = jnp.array(offsets, dtype=jnp.int32)
    key, ke = jax.random.split(key)
    stacked_table = jax.random.normal(ke, (acc, embedding_dim),
                                      dtype=jnp.float32).astype(jnp.bfloat16)

    bottom_input_size = embedding_dim * len(vocab_sizes)       # 40
    d_in_padded = _round_up(bottom_input_size, 128)            # 128 (lane-dense)

    key, kb = jax.random.split(key)
    bottom_params = make_mlp_params(kb, bottom_input_size, bottom_hidden_units,
                                    pad_input_to=d_in_padded)

    tower_params = []
    for t in range(num_tasks):
        key, kt = jax.random.split(key)
        tower_params.append(
            make_mlp_params(kt, bottom_hidden_units[-1], tower_hidden_units,
                            output_size=tower_output_sizes[t]))

    # Deterministic integer feature indices, shape (B, num_fields).
    key, kx = jax.random.split(key)
    max_vocab = jnp.array(sizes, dtype=jnp.int32)
    raw = jax.random.randint(kx, (B, len(sizes)), 0, 1 << 20, dtype=jnp.int32)
    indices = raw % max_vocab[None, :]

    outputs = shared_bottom_forward(indices, stacked_table, field_offsets,
                                    bottom_params, tower_params, targets,
                                    d_in_padded)

    for name, val in outputs.items():
        val = jax.block_until_ready(val)
        assert val.shape == (B, 1), (name, val.shape)
        assert bool(jnp.all(jnp.isfinite(val)))
        assert bool(jnp.all((val >= 0.0) & (val <= 1.0)))   # sigmoid output range

    print("KERNEL_OK")
</pallas_src>

<mosaic_0001>
module attributes {stable_mosaic.version = 11 : i64} {
  func.func @_fused_shared_bottom_kernel(%arg0: i32, %arg1: memref<8x128xbf16, #tpu.memory_space<vmem>>, %arg2: memref<128x512xbf16, #tpu.memory_space<vmem>>, %arg3: memref<1x512xf32, #tpu.memory_space<vmem>>, %arg4: memref<512x256xbf16, #tpu.memory_space<vmem>>, %arg5: memref<1x256xf32, #tpu.memory_space<vmem>>, %arg6: memref<256x128xbf16, #tpu.memory_space<vmem>>, %arg7: memref<1x128xf32, #tpu.memory_space<vmem>>, %arg8: memref<128x128xbf16, #tpu.memory_space<vmem>>, %arg9: memref<1x128xf32, #tpu.memory_space<vmem>>, %arg10: memref<128x64xbf16, #tpu.memory_space<vmem>>, %arg11: memref<1x64xf32, #tpu.memory_space<vmem>>, %arg12: memref<1x64xf32, #tpu.memory_space<vmem>>, %arg13: memref<1x1xf32, #tpu.memory_space<vmem>>, %arg14: memref<8x1xf32, #tpu.memory_space<vmem>>) attributes {dimension_semantics = [#tpu.dimension_semantics<parallel>], iteration_bounds = array<i64: 1>, scalar_prefetch = 0 : i64, scratch_operands = 0 : i64, tpu.core_type = #tpu.core_type<tc>, window_params = [{transform_indices = @transform_0, window_bounds = array<i64: 8, 128>}, {pipeline_mode = #tpu.pipeline_mode<synchronous>, transform_indices = @transform_1, window_bounds = array<i64: 128, 512>}, {pipeline_mode = #tpu.pipeline_mode<synchronous>, transform_indices = @transform_2, window_bounds = array<i64: 1, 512>}, {pipeline_mode = #tpu.pipeline_mode<synchronous>, transform_indices = @transform_3, window_bounds = array<i64: 512, 256>}, {pipeline_mode = #tpu.pipeline_mode<synchronous>, transform_indices = @transform_4, window_bounds = array<i64: 1, 256>}, {pipeline_mode = #tpu.pipeline_mode<synchronous>, transform_indices = @transform_5, window_bounds = array<i64: 256, 128>}, {pipeline_mode = #tpu.pipeline_mode<synchronous>, transform_indices = @transform_6, window_bounds = array<i64: 1, 128>}, {pipeline_mode = #tpu.pipeline_mode<synchronous>, transform_indices = @transform_7, window_bounds = array<i64: 128, 128>}, {pipeline_mode = #tpu.pipeline_mode<synchronous>, transform_indices = @transform_8, window_bounds = array<i64: 1, 128>}, {pipeline_mode = #tpu.pipeline_mode<synchronous>, transform_indices = @transform_9, window_bounds = array<i64: 128, 64>}, {pipeline_mode = #tpu.pipeline_mode<synchronous>, transform_indices = @transform_10, window_bounds = array<i64: 1, 64>}, {pipeline_mode = #tpu.pipeline_mode<synchronous>, transform_indices = @transform_11, window_bounds = array<i64: 1, 64>}, {pipeline_mode = #tpu.pipeline_mode<synchronous>, transform_indices = @transform_12, window_bounds = array<i64: 1, 1>}, {transform_indices = @transform_13, window_bounds = array<i64: 8, 1>}]} {
    %c0 = arith.constant 0 : index
    %c0_0 = arith.constant 0 : index
    %0 = vector.load %arg1[%c0, %c0_0] : memref<8x128xbf16, #tpu.memory_space<vmem>>, vector<8x128xbf16>
    %c0_1 = arith.constant 0 : index
    %c0_2 = arith.constant 0 : index
    %1 = vector.load %arg2[%c0_1, %c0_2] : memref<128x512xbf16, #tpu.memory_space<vmem>>, vector<128x512xbf16>
    %cst = arith.constant dense<0.000000e+00> : vector<8x512xf32>
    %2 = tpu.matmul %0, %1, %cst {dimension_numbers = #tpu.dot_dimension_numbers<[1], [0], [0], [1], [0, 0, 1, 1], [], []>} : vector<8x128xbf16>, vector<128x512xbf16>, vector<8x512xf32> -> vector<8x512xf32>
    %c0_3 = arith.constant 0 : index
    %c0_4 = arith.constant 0 : index
    %3 = vector.load %arg3[%c0_3, %c0_4] : memref<1x512xf32, #tpu.memory_space<vmem>>, vector<1x512xf32>
    %4 = vector.broadcast %3 : vector<1x512xf32> to vector<8x512xf32>
    %5 = arith.addf %2, %4 : vector<8x512xf32>
    %cst_5 = arith.constant 0.000000e+00 : f32
    %6 = vector.broadcast %cst_5 : f32 to vector<8x512xf32>
    %7 = arith.maximumf %5, %6 : vector<8x512xf32>
    %8 = arith.truncf %7 : vector<8x512xf32> to vector<8x512xbf16>
    %c0_6 = arith.constant 0 : index
    %c0_7 = arith.constant 0 : index
    %9 = vector.load %arg4[%c0_6, %c0_7] : memref<512x256xbf16, #tpu.memory_space<vmem>>, vector<512x256xbf16>
    %cst_8 = arith.constant dense<0.000000e+00> : vector<8x256xf32>
    %10 = tpu.matmul %8, %9, %cst_8 {dimension_numbers = #tpu.dot_dimension_numbers<[1], [0], [0], [1], [0, 0, 1, 1], [], []>} : vector<8x512xbf16>, vector<512x256xbf16>, vector<8x256xf32> -> vector<8x256xf32>
    %c0_9 = arith.constant 0 : index
    %c0_10 = arith.constant 0 : index
    %11 = vector.load %arg5[%c0_9, %c0_10] : memref<1x256xf32, #tpu.memory_space<vmem>>, vector<1x256xf32>
    %12 = vector.broadcast %11 : vector<1x256xf32> to vector<8x256xf32>
    %13 = arith.addf %10, %12 : vector<8x256xf32>
    %cst_11 = arith.constant 0.000000e+00 : f32
    %14 = vector.broadcast %cst_11 : f32 to vector<8x256xf32>
    %15 = arith.maximumf %13, %14 : vector<8x256xf32>
    %16 = arith.truncf %15 : vector<8x256xf32> to vector<8x256xbf16>
    %c0_12 = arith.constant 0 : index
    %c0_13 = arith.constant 0 : index
    %17 = vector.load %arg6[%c0_12, %c0_13] : memref<256x128xbf16, #tpu.memory_space<vmem>>, vector<256x128xbf16>
    %cst_14 = arith.constant dense<0.000000e+00> : vector<8x128xf32>
    %18 = tpu.matmul %16, %17, %cst_14 {dimension_numbers = #tpu.dot_dimension_numbers<[1], [0], [0], [1], [0, 0, 1, 1], [], []>} : vector<8x256xbf16>, vector<256x128xbf16>, vector<8x128xf32> -> vector<8x128xf32>
    %c0_15 = arith.constant 0 : index
    %c0_16 = arith.constant 0 : index
    %19 = vector.load %arg7[%c0_15, %c0_16] : memref<1x128xf32, #tpu.memory_space<vmem>>, vector<1x128xf32>
    %20 = vector.broadcast %19 : vector<1x128xf32> to vector<8x128xf32>
    %21 = arith.addf %18, %20 : vector<8x128xf32>
    %cst_17 = arith.constant 0.000000e+00 : f32
    %22 = vector.broadcast %cst_17 : f32 to vector<8x128xf32>
    %23 = arith.maximumf %21, %22 : vector<8x128xf32>
    %24 = arith.truncf %23 : vector<8x128xf32> to vector<8x128xbf16>
    %c0_18 = arith.constant 0 : index
    %c0_19 = arith.constant 0 : index
    %25 = vector.load %arg8[%c0_18, %c0_19] : memref<128x128xbf16, #tpu.memory_space<vmem>>, vector<128x128xbf16>
    %cst_20 = arith.constant dense<0.000000e+00> : vector<8x128xf32>
    %26 = tpu.matmul %24, %25, %cst_20 {dimension_numbers = #tpu.dot_dimension_numbers<[1], [0], [0], [1], [0, 0, 1, 1], [], []>} : vector<8x128xbf16>, vector<128x128xbf16>, vector<8x128xf32> -> vector<8x128xf32>
    %c0_21 = arith.constant 0 : index
    %c0_22 = arith.constant 0 : index
    %27 = vector.load %arg9[%c0_21, %c0_22] : memref<1x128xf32, #tpu.memory_space<vmem>>, vector<1x128xf32>
    %28 = vector.broadcast %27 : vector<1x128xf32> to vector<8x128xf32>
    %29 = arith.addf %26, %28 : vector<8x128xf32>
    %cst_23 = arith.constant 0.000000e+00 : f32
    %30 = vector.broadcast %cst_23 : f32 to vector<8x128xf32>
    %31 = arith.maximumf %29, %30 : vector<8x128xf32>
    %32 = arith.truncf %31 : vector<8x128xf32> to vector<8x128xbf16>
    %c0_24 = arith.constant 0 : index
    %c0_25 = arith.constant 0 : index
    %33 = vector.load %arg10[%c0_24, %c0_25] : memref<128x64xbf16, #tpu.memory_space<vmem>>, vector<128x64xbf16>
    %cst_26 = arith.constant dense<0.000000e+00> : vector<8x64xf32>
    %34 = tpu.matmul %32, %33, %cst_26 {dimension_numbers = #tpu.dot_dimension_numbers<[1], [0], [0], [1], [0, 0, 1, 1], [], []>} : vector<8x128xbf16>, vector<128x64xbf16>, vector<8x64xf32> -> vector<8x64xf32>
    %c0_27 = arith.constant 0 : index
    %c0_28 = arith.constant 0 : index
    %35 = vector.load %arg11[%c0_27, %c0_28] : memref<1x64xf32, #tpu.memory_space<vmem>>, vector<1x64xf32>
    %36 = vector.broadcast %35 : vector<1x64xf32> to vector<8x64xf32>
    %37 = arith.addf %34, %36 : vector<8x64xf32>
    %cst_29 = arith.constant 0.000000e+00 : f32
    %38 = vector.broadcast %cst_29 : f32 to vector<8x64xf32>
    %39 = arith.maximumf %37, %38 : vector<8x64xf32>
    %40 = arith.truncf %39 : vector<8x64xf32> to vector<8x64xbf16>
    %c0_30 = arith.constant 0 : index
    %c0_31 = arith.constant 0 : index
    %41 = vector.load %arg12[%c0_30, %c0_31] : memref<1x64xf32, #tpu.memory_space<vmem>>, vector<1x64xf32>
    %c0_32 = arith.constant 0 : index
    %c0_33 = arith.constant 0 : index
    %42 = vector.load %arg13[%c0_32, %c0_33] : memref<1x1xf32, #tpu.memory_space<vmem>>, vector<1x1xf32>
    %43 = arith.extf %40 : vector<8x64xbf16> to vector<8x64xf32>
    %44 = vector.broadcast %41 : vector<1x64xf32> to vector<8x64xf32>
    %45 = arith.mulf %43, %44 : vector<8x64xf32>
    %cst_34 = arith.constant dense<0.000000e+00> : vector<8xf32>
    %46 = vector.multi_reduction <add>, %45, %cst_34 [1] : vector<8x64xf32> to vector<8xf32>
    %47 = vector.shape_cast %46 : vector<8xf32> to vector<8x1xf32>
    %48 = vector.broadcast %42 : vector<1x1xf32> to vector<8x1xf32>
    %49 = arith.addf %47, %48 : vector<8x1xf32>
    %50 = arith.negf %49 : vector<8x1xf32>
    %51 = math.exp %50 : vector<8x1xf32>
    %cst_35 = arith.constant 1.000000e+00 : f32
    %52 = vector.broadcast %cst_35 : f32 to vector<8x1xf32>
    %53 = arith.addf %52, %51 : vector<8x1xf32>
    %54 = arith.divf %52, %53 : vector<8x1xf32>
    %c0_36 = arith.constant 0 : index
    %c0_37 = arith.constant 0 : index
    %55 = vector.load %arg14[%c0_36, %c0_37] : memref<8x1xf32, #tpu.memory_space<vmem>>, vector<8x1xf32>
    tpu.vector_store %arg14[%c0_36, %c0_37], %54 {strides = array<i32>} : memref<8x1xf32, #tpu.memory_space<vmem>>, vector<8x1xf32>,
    return
  }
  func.func @transform_0(%arg0: i32) -> (i32, i32) {
    %c0_i32 = arith.constant 0 : i32
    %c0_i32_0 = arith.constant 0 : i32
    return %arg0, %c0_i32 : i32, i32
  }
  func.func @transform_1(%arg0: i32) -> (i32, i32) {
    %c0_i32 = arith.constant 0 : i32
    %c0_i32_0 = arith.constant 0 : i32
    %c0_i32_1 = arith.constant 0 : i32
    return %c0_i32, %c0_i32_0 : i32, i32
  }
  func.func @transform_2(%arg0: i32) -> (i32, i32) {
    %c0_i32 = arith.constant 0 : i32
    %c0_i32_0 = arith.constant 0 : i32
    %c0_i32_1 = arith.constant 0 : i32
    return %c0_i32, %c0_i32_0 : i32, i32
  }
  func.func @transform_3(%arg0: i32) -> (i32, i32) {
    %c0_i32 = arith.constant 0 : i32
    %c0_i32_0 = arith.constant 0 : i32
    %c0_i32_1 = arith.constant 0 : i32
    return %c0_i32, %c0_i32_0 : i32, i32
  }
  func.func @transform_4(%arg0: i32) -> (i32, i32) {
    %c0_i32 = arith.constant 0 : i32
    %c0_i32_0 = arith.constant 0 : i32
    %c0_i32_1 = arith.constant 0 : i32
    return %c0_i32, %c0_i32_0 : i32, i32
  }
  func.func @transform_5(%arg0: i32) -> (i32, i32) {
    %c0_i32 = arith.constant 0 : i32
    %c0_i32_0 = arith.constant 0 : i32
    %c0_i32_1 = arith.constant 0 : i32
    return %c0_i32, %c0_i32_0 : i32, i32
  }
  func.func @transform_6(%arg0: i32) -> (i32, i32) {
    %c0_i32 = arith.constant 0 : i32
    %c0_i32_0 = arith.constant 0 : i32
    %c0_i32_1 = arith.constant 0 : i32
    return %c0_i32, %c0_i32_0 : i32, i32
  }
  func.func @transform_7(%arg0: i32) -> (i32, i32) {
    %c0_i32 = arith.constant 0 : i32
    %c0_i32_0 = arith.constant 0 : i32
    %c0_i32_1 = arith.constant 0 : i32
    return %c0_i32, %c0_i32_0 : i32, i32
  }
  func.func @transform_8(%arg0: i32) -> (i32, i32) {
    %c0_i32 = arith.constant 0 : i32
    %c0_i32_0 = arith.constant 0 : i32
    %c0_i32_1 = arith.constant 0 : i32
    return %c0_i32, %c0_i32_0 : i32, i32
  }
  func.func @transform_9(%arg0: i32) -> (i32, i32) {
    %c0_i32 = arith.constant 0 : i32
    %c0_i32_0 = arith.constant 0 : i32
    %c0_i32_1 = arith.constant 0 : i32
    return %c0_i32, %c0_i32_0 : i32, i32
  }
  func.func @transform_10(%arg0: i32) -> (i32, i32) {
    %c0_i32 = arith.constant 0 : i32
    %c0_i32_0 = arith.constant 0 : i32
    %c0_i32_1 = arith.constant 0 : i32
    return %c0_i32, %c0_i32_0 : i32, i32
  }
  func.func @transform_11(%arg0: i32) -> (i32, i32) {
    %c0_i32 = arith.constant 0 : i32
    %c0_i32_0 = arith.constant 0 : i32
    %c0_i32_1 = arith.constant 0 : i32
    return %c0_i32, %c0_i32_0 : i32, i32
  }
  func.func @transform_12(%arg0: i32) -> (i32, i32) {
    %c0_i32 = arith.constant 0 : i32
    %c0_i32_0 = arith.constant 0 : i32
    %c0_i32_1 = arith.constant 0 : i32
    return %c0_i32, %c0_i32_0 : i32, i32
  }
  func.func @transform_13(%arg0: i32) -> (i32, i32) {
    %c0_i32 = arith.constant 0 : i32
    %c0_i32_0 = arith.constant 0 : i32
    return %arg0, %c0_i32 : i32, i32
  }
}

module attributes {stable_mosaic.version = 11 : i64} {
  func.func @_fused_shared_bottom_kernel(%arg0: i32, %arg1: memref<8x128xbf16, #tpu.memory_space<vmem>>, %arg2: memref<128x512xbf16, #tpu.memory_space<vmem>>, %arg3: memref<1x512xf32, #tpu.memory_space<vmem>>, %arg4: memref<512x256xbf16, #tpu.memory_space<vmem>>, %arg5: memref<1x256xf32, #tpu.memory_space<vmem>>, %arg6: memref<256x128xbf16, #tpu.memory_space<vmem>>, %arg7: memref<1x128xf32, #tpu.memory_space<vmem>>, %arg8: memref<128x128xbf16, #tpu.memory_space<vmem>>, %arg9: memref<1x128xf32, #tpu.memory_space<vmem>>, %arg10: memref<128x64xbf16, #tpu.memory_space<vmem>>, %arg11: memref<1x64xf32, #tpu.memory_space<vmem>>, %arg12: memref<1x64xf32, #tpu.memory_space<vmem>>, %arg13: memref<1x1xf32, #tpu.memory_space<vmem>>, %arg14: memref<8x1xf32, #tpu.memory_space<vmem>>) attributes {dimension_semantics = [#tpu.dimension_semantics<parallel>], iteration_bounds = array<i64: 1>, scalar_prefetch = 0 : i64, scratch_operands = 0 : i64, tpu.core_type = #tpu.core_type<tc>, window_params = [{transform_indices = @transform_0, window_bounds = array<i64: 8, 128>}, {pipeline_mode = #tpu.pipeline_mode<synchronous>, transform_indices = @transform_1, window_bounds = array<i64: 128, 512>}, {pipeline_mode = #tpu.pipeline_mode<synchronous>, transform_indices = @transform_2, window_bounds = array<i64: 1, 512>}, {pipeline_mode = #tpu.pipeline_mode<synchronous>, transform_indices = @transform_3, window_bounds = array<i64: 512, 256>}, {pipeline_mode = #tpu.pipeline_mode<synchronous>, transform_indices = @transform_4, window_bounds = array<i64: 1, 256>}, {pipeline_mode = #tpu.pipeline_mode<synchronous>, transform_indices = @transform_5, window_bounds = array<i64: 256, 128>}, {pipeline_mode = #tpu.pipeline_mode<synchronous>, transform_indices = @transform_6, window_bounds = array<i64: 1, 128>}, {pipeline_mode = #tpu.pipeline_mode<synchronous>, transform_indices = @transform_7, window_bounds = array<i64: 128, 128>}, {pipeline_mode = #tpu.pipeline_mode<synchronous>, transform_indices = @transform_8, window_bounds = array<i64: 1, 128>}, {pipeline_mode = #tpu.pipeline_mode<synchronous>, transform_indices = @transform_9, window_bounds = array<i64: 128, 64>}, {pipeline_mode = #tpu.pipeline_mode<synchronous>, transform_indices = @transform_10, window_bounds = array<i64: 1, 64>}, {pipeline_mode = #tpu.pipeline_mode<synchronous>, transform_indices = @transform_11, window_bounds = array<i64: 1, 64>}, {pipeline_mode = #tpu.pipeline_mode<synchronous>, transform_indices = @transform_12, window_bounds = array<i64: 1, 1>}, {transform_indices = @transform_13, window_bounds = array<i64: 8, 1>}]} {
    %c0 = arith.constant 0 : index
    %c0_0 = arith.constant 0 : index
    %0 = vector.load %arg1[%c0, %c0_0] : memref<8x128xbf16, #tpu.memory_space<vmem>>, vector<8x128xbf16>
    %c0_1 = arith.constant 0 : index
    %c0_2 = arith.constant 0 : index
    %1 = vector.load %arg2[%c0_1, %c0_2] : memref<128x512xbf16, #tpu.memory_space<vmem>>, vector<128x512xbf16>
    %cst = arith.constant dense<0.000000e+00> : vector<8x512xf32>
    %2 = tpu.matmul %0, %1, %cst {dimension_numbers = #tpu.dot_dimension_numbers<[1], [0], [0], [1], [0, 0, 1, 1], [], []>} : vector<8x128xbf16>, vector<128x512xbf16>, vector<8x512xf32> -> vector<8x512xf32>
    %c0_3 = arith.constant 0 : index
    %c0_4 = arith.constant 0 : index
    %3 = vector.load %arg3[%c0_3, %c0_4] : memref<1x512xf32, #tpu.memory_space<vmem>>, vector<1x512xf32>
    %4 = vector.broadcast %3 : vector<1x512xf32> to vector<8x512xf32>
    %5 = arith.addf %2, %4 : vector<8x512xf32>
    %cst_5 = arith.constant 0.000000e+00 : f32
    %6 = vector.broadcast %cst_5 : f32 to vector<8x512xf32>
    %7 = arith.maximumf %5, %6 : vector<8x512xf32>
    %8 = arith.truncf %7 : vector<8x512xf32> to vector<8x512xbf16>
    %c0_6 = arith.constant 0 : index
    %c0_7 = arith.constant 0 : index
    %9 = vector.load %arg4[%c0_6, %c0_7] : memref<512x256xbf16, #tpu.memory_space<vmem>>, vector<512x256xbf16>
    %cst_8 = arith.constant dense<0.000000e+00> : vector<8x256xf32>
    %10 = tpu.matmul %8, %9, %cst_8 {dimension_numbers = #tpu.dot_dimension_numbers<[1], [0], [0], [1], [0, 0, 1, 1], [], []>} : vector<8x512xbf16>, vector<512x256xbf16>, vector<8x256xf32> -> vector<8x256xf32>
    %c0_9 = arith.constant 0 : index
    %c0_10 = arith.constant 0 : index
    %11 = vector.load %arg5[%c0_9, %c0_10] : memref<1x256xf32, #tpu.memory_space<vmem>>, vector<1x256xf32>
    %12 = vector.broadcast %11 : vector<1x256xf32> to vector<8x256xf32>
    %13 = arith.addf %10, %12 : vector<8x256xf32>
    %cst_11 = arith.constant 0.000000e+00 : f32
    %14 = vector.broadcast %cst_11 : f32 to vector<8x256xf32>
    %15 = arith.maximumf %13, %14 : vector<8x256xf32>
    %16 = arith.truncf %15 : vector<8x256xf32> to vector<8x256xbf16>
    %c0_12 = arith.constant 0 : index
    %c0_13 = arith.constant 0 : index
    %17 = vector.load %arg6[%c0_12, %c0_13] : memref<256x128xbf16, #tpu.memory_space<vmem>>, vector<256x128xbf16>
    %cst_14 = arith.constant dense<0.000000e+00> : vector<8x128xf32>
    %18 = tpu.matmul %16, %17, %cst_14 {dimension_numbers = #tpu.dot_dimension_numbers<[1], [0], [0], [1], [0, 0, 1, 1], [], []>} : vector<8x256xbf16>, vector<256x128xbf16>, vector<8x128xf32> -> vector<8x128xf32>
    %c0_15 = arith.constant 0 : index
    %c0_16 = arith.constant 0 : index
    %19 = vector.load %arg7[%c0_15, %c0_16] : memref<1x128xf32, #tpu.memory_space<vmem>>, vector<1x128xf32>
    %20 = vector.broadcast %19 : vector<1x128xf32> to vector<8x128xf32>
    %21 = arith.addf %18, %20 : vector<8x128xf32>
    %cst_17 = arith.constant 0.000000e+00 : f32
    %22 = vector.broadcast %cst_17 : f32 to vector<8x128xf32>
    %23 = arith.maximumf %21, %22 : vector<8x128xf32>
    %24 = arith.truncf %23 : vector<8x128xf32> to vector<8x128xbf16>
    %c0_18 = arith.constant 0 : index
    %c0_19 = arith.constant 0 : index
    %25 = vector.load %arg8[%c0_18, %c0_19] : memref<128x128xbf16, #tpu.memory_space<vmem>>, vector<128x128xbf16>
    %cst_20 = arith.constant dense<0.000000e+00> : vector<8x128xf32>
    %26 = tpu.matmul %24, %25, %cst_20 {dimension_numbers = #tpu.dot_dimension_numbers<[1], [0], [0], [1], [0, 0, 1, 1], [], []>} : vector<8x128xbf16>, vector<128x128xbf16>, vector<8x128xf32> -> vector<8x128xf32>
    %c0_21 = arith.constant 0 : index
    %c0_22 = arith.constant 0 : index
    %27 = vector.load %arg9[%c0_21, %c0_22] : memref<1x128xf32, #tpu.memory_space<vmem>>, vector<1x128xf32>
    %28 = vector.broadcast %27 : vector<1x128xf32> to vector<8x128xf32>
    %29 = arith.addf %26, %28 : vector<8x128xf32>
    %cst_23 = arith.constant 0.000000e+00 : f32
    %30 = vector.broadcast %cst_23 : f32 to vector<8x128xf32>
    %31 = arith.maximumf %29, %30 : vector<8x128xf32>
    %32 = arith.truncf %31 : vector<8x128xf32> to vector<8x128xbf16>
    %c0_24 = arith.constant 0 : index
    %c0_25 = arith.constant 0 : index
    %33 = vector.load %arg10[%c0_24, %c0_25] : memref<128x64xbf16, #tpu.memory_space<vmem>>, vector<128x64xbf16>
    %cst_26 = arith.constant dense<0.000000e+00> : vector<8x64xf32>
    %34 = tpu.matmul %32, %33, %cst_26 {dimension_numbers = #tpu.dot_dimension_numbers<[1], [0], [0], [1], [0, 0, 1, 1], [], []>} : vector<8x128xbf16>, vector<128x64xbf16>, vector<8x64xf32> -> vector<8x64xf32>
    %c0_27 = arith.constant 0 : index
    %c0_28 = arith.constant 0 : index
    %35 = vector.load %arg11[%c0_27, %c0_28] : memref<1x64xf32, #tpu.memory_space<vmem>>, vector<1x64xf32>
    %36 = vector.broadcast %35 : vector<1x64xf32> to vector<8x64xf32>
    %37 = arith.addf %34, %36 : vector<8x64xf32>
    %cst_29 = arith.constant 0.000000e+00 : f32
    %38 = vector.broadcast %cst_29 : f32 to vector<8x64xf32>
    %39 = arith.maximumf %37, %38 : vector<8x64xf32>
    %40 = arith.truncf %39 : vector<8x64xf32> to vector<8x64xbf16>
    %c0_30 = arith.constant 0 : index
    %c0_31 = arith.constant 0 : index
    %41 = vector.load %arg12[%c0_30, %c0_31] : memref<1x64xf32, #tpu.memory_space<vmem>>, vector<1x64xf32>
    %c0_32 = arith.constant 0 : index
    %c0_33 = arith.constant 0 : index
    %42 = vector.load %arg13[%c0_32, %c0_33] : memref<1x1xf32, #tpu.memory_space<vmem>>, vector<1x1xf32>
    %43 = arith.extf %40 : vector<8x64xbf16> to vector<8x64xf32>
    %44 = vector.broadcast %41 : vector<1x64xf32> to vector<8x64xf32>
    %45 = arith.mulf %43, %44 : vector<8x64xf32>
    %cst_34 = arith.constant dense<0.000000e+00> : vector<8xf32>
    %46 = vector.multi_reduction <add>, %45, %cst_34 [1] : vector<8x64xf32> to vector<8xf32>
    %47 = vector.shape_cast %46 : vector<8xf32> to vector<8x1xf32>
    %48 = vector.broadcast %42 : vector<1x1xf32> to vector<8x1xf32>
    %49 = arith.addf %47, %48 : vector<8x1xf32>
    %50 = arith.negf %49 : vector<8x1xf32>
    %51 = math.exp %50 : vector<8x1xf32>
    %cst_35 = arith.constant 1.000000e+00 : f32
    %52 = vector.broadcast %cst_35 : f32 to vector<8x1xf32>
    %53 = arith.addf %52, %51 : vector<8x1xf32>
    %54 = arith.divf %52, %53 : vector<8x1xf32>
    %c0_36 = arith.constant 0 : index
    %c0_37 = arith.constant 0 : index
    %55 = vector.load %arg14[%c0_36, %c0_37] : memref<8x1xf32, #tpu.memory_space<vmem>>, vector<8x1xf32>
    tpu.vector_store %arg14[%c0_36, %c0_37], %54 {strides = array<i32>} : memref<8x1xf32, #tpu.memory_space<vmem>>, vector<8x1xf32>,
    return
  }
  func.func @transform_0(%arg0: i32) -> (i32, i32) {
    %c0_i32 = arith.constant 0 : i32
    %c0_i32_0 = arith.constant 0 : i32
    return %arg0, %c0_i32 : i32, i32
  }
  func.func @transform_1(%arg0: i32) -> (i32, i32) {
    %c0_i32 = arith.constant 0 : i32
    %c0_i32_0 = arith.constant 0 : i32
    %c0_i32_1 = arith.constant 0 : i32
    return %c0_i32, %c0_i32_0 : i32, i32
  }
  func.func @transform_2(%arg0: i32) -> (i32, i32) {
    %c0_i32 = arith.constant 0 : i32
    %c0_i32_0 = arith.constant 0 : i32
    %c0_i32_1 = arith.constant 0 : i32
    return %c0_i32, %c0_i32_0 : i32, i32
  }
  func.func @transform_3(%arg0: i32) -> (i32, i32) {
    %c0_i32 = arith.constant 0 : i32
    %c0_i32_0 = arith.constant 0 : i32
    %c0_i32_1 = arith.constant 0 : i32
    return %c0_i32, %c0_i32_0 : i32, i32
  }
  func.func @transform_4(%arg0: i32) -> (i32, i32) {
    %c0_i32 = arith.constant 0 : i32
    %c0_i32_0 = arith.constant 0 : i32
    %c0_i32_1 = arith.constant 0 : i32
    return %c0_i32, %c0_i32_0 : i32, i32
  }
  func.func @transform_5(%arg0: i32) -> (i32, i32) {
    %c0_i32 = arith.constant 0 : i32
    %c0_i32_0 = arith.constant 0 : i32
    %c0_i32_1 = arith.constant 0 : i32
    return %c0_i32, %c0_i32_0 : i32, i32
  }
  func.func @transform_6(%arg0: i32) -> (i32, i32) {
    %c0_i32 = arith.constant 0 : i32
    %c0_i32_0 = arith.constant 0 : i32
    %c0_i32_1 = arith.constant 0 : i32
    return %c0_i32, %c0_i32_0 : i32, i32
  }
  func.func @transform_7(%arg0: i32) -> (i32, i32) {
    %c0_i32 = arith.constant 0 : i32
    %c0_i32_0 = arith.constant 0 : i32
    %c0_i32_1 = arith.constant 0 : i32
    return %c0_i32, %c0_i32_0 : i32, i32
  }
  func.func @transform_8(%arg0: i32) -> (i32, i32) {
    %c0_i32 = arith.constant 0 : i32
    %c0_i32_0 = arith.constant 0 : i32
    %c0_i32_1 = arith.constant 0 : i32
    return %c0_i32, %c0_i32_0 : i32, i32
  }
  func.func @transform_9(%arg0: i32) -> (i32, i32) {
    %c0_i32 = arith.constant 0 : i32
    %c0_i32_0 = arith.constant 0 : i32
    %c0_i32_1 = arith.constant 0 : i32
    return %c0_i32, %c0_i32_0 : i32, i32
  }
  func.func @transform_10(%arg0: i32) -> (i32, i32) {
    %c0_i32 = arith.constant 0 : i32
    %c0_i32_0 = arith.constant 0 : i32
    %c0_i32_1 = arith.constant 0 : i32
    return %c0_i32, %c0_i32_0 : i32, i32
  }
  func.func @transform_11(%arg0: i32) -> (i32, i32) {
    %c0_i32 = arith.constant 0 : i32
    %c0_i32_0 = arith.constant 0 : i32
    %c0_i32_1 = arith.constant 0 : i32
    return %c0_i32, %c0_i32_0 : i32, i32
  }
  func.func @transform_12(%arg0: i32) -> (i32, i32) {
    %c0_i32 = arith.constant 0 : i32
    %c0_i32_0 = arith.constant 0 : i32
    %c0_i32_1 = arith.constant 0 : i32
    return %c0_i32, %c0_i32_0 : i32, i32
  }
  func.func @transform_13(%arg0: i32) -> (i32, i32) {
    %c0_i32 = arith.constant 0 : i32
    %c0_i32_0 = arith.constant 0 : i32
    return %arg0, %c0_i32 : i32, i32
  }
}

</mosaic_0001>

<bundles_post_ra>
// kernel: tpu_custom_call.1
= control target key start
LH: loop header
LB: loop body
LE: loop exit
PB: predicated region body
PF: predicated region fallthrough
CT: control target
= control target key end

     0   :  { %s1981_s0 = inlined_call_operand.vmem [shape: bf16[8,128], index: 0, kind: input, shape index: {}]   ;;  %s1982_s1 = inlined_call_operand.hbm [shape: bf16[128,512], index: 1, kind: input, shape index: {}]   ;;  %s1983_s2 = inlined_call_operand.vmem [shape: f32[1,512], index: 2, kind: input, shape index: {}]   ;;  %s1984_s3 = inlined_call_operand.hbm [shape: bf16[512,256], index: 3, kind: input, shape index: {}]   ;;  %s1985_s4 = inlined_call_operand.vmem [shape: f32[1,256], index: 4, kind: input, shape index: {}]   ;;  %s1986_s5 = inlined_call_operand.hbm [shape: bf16[256,128], index: 5, kind: input, shape index: {}]   ;;  %s1987_s6 = inlined_call_operand.vmem [shape: f32[1,128], index: 6, kind: input, shape index: {}]   ;;  %s1988_s7 = inlined_call_operand.vmem [shape: bf16[128,128], index: 7, kind: input, shape index: {}]   ;;  %s1989_s8 = inlined_call_operand.vmem [shape: f32[1,128], index: 8, kind: input, shape index: {}]   ;;  %s1990_s9 = inlined_call_operand.vmem [shape: bf16[128,64], index: 9, kind: input, shape index: {}]   ;;  %s1991_s10 = inlined_call_operand.vmem [shape: f32[1,64], index: 10, kind: input, shape index: {}]   ;;  %s1992_s11 = inlined_call_operand.vmem [shape: f32[1,64], index: 11, kind: input, shape index: {}]   ;;  %s1993_s12 = inlined_call_operand.<no memory space> [shape: f32[1,1], index: 12, kind: input, shape index: {}]   ;;  %s1994_s13 = inlined_call_operand.vmem [shape: f32[8,1], index: 13, kind: output, shape index: {}]  }
   0x1   :  { %v18_v0 = vstv %s1993_s12 }
   0x2   :  { %19 = vst [vmem:[#allocation2] sm:$0x1] %v18_v0 }
   0x3   :  { %20 = vsyncpa [#allocation4], 0 }
   0x4   :  { %21 = vsyncpa [#allocation6], 0  ;;  %s1783_s27 = smov [#allocation5]  }
   0x5   :  { %s43_s28 = sshll.u32 %s1783_s27, 4  ;;  %s44_s28 = int_to_ptr.vmem [resolvable:$true] %s43_s28 }
   0x6   :  { %s1727_s29 = scalar_lea.vmem %s44_s28, 8192  ;;  %p1732_p1 = scmp.lt.s32.totalorder %s44_s28, %s44_s28 }
   0x7   :  { %p1728_p0 = scmp.ne.s32.totalorder %s44_s28, %s1727_s29  ;;  %p1733_p2 = scmp.lt.s32.totalorder %s1727_s29, %s1727_s29 }
   0x9   :  { %p1734_p3 = por %p1733_p2, %p1732_p1 }
   0xb   :  { %p1735_p4 = pnand %p1734_p3, %p1728_p0 }
   0xd   :  { %1738 = shalt.err (!%p1735_p4)
}
   0xe   :  { %s1784_s30 = smov 128   ;;  %s1785_s14 = smov 8  }
   0xf   :  { %49 = dma.hbm_to_vmem [thread:$0]  %s1984_s3, 8192, %s44_s28, [#allocation6], %s1784_s30, %s1784_s30, %s1785_s14  }
  0x10   :  { %s1786_s12 = smov [#allocation3]  }
  0x11   :  { %s29_s17 = sshll.u32 %s1786_s12, 4  ;;  %s30_s17 = int_to_ptr.vmem [resolvable:$true] %s29_s17 }
  0x12   :  { %s1747_s18 = scalar_lea.vmem %s30_s17, 4096  ;;  %p1752_p6 = scmp.lt.s32.totalorder %s30_s17, %s30_s17 }
  0x13   :  { %p1748_p5 = scmp.ne.s32.totalorder %s30_s17, %s1747_s18  ;;  %p1753_p7 = scmp.lt.s32.totalorder %s1747_s18, %s1747_s18 }
  0x15   :  { %p1754_p8 = por %p1753_p7, %p1752_p6 }
  0x17   :  { %p1755_p9 = pnand %p1754_p8, %p1748_p5 }
  0x19   :  { %1758 = shalt.err (!%p1755_p9)
}
  0x1a   :  { %s1787_s19 = smov 256   ;;  %s1788_s20 = smov 16  }
  0x1b   :  { %35 = dma.hbm_to_vmem [thread:$0]  %s1982_s1, 4096, %s30_s17, [#allocation4], %s1787_s19, %s1787_s19, %s1788_s20  }
  0x1c   :  { %s1789_s23 = smov [#allocation7]  }
  0x1d   :  { %s57_s24 = sshll.u32 %s1789_s23, 4  ;;  %s58_s24 = int_to_ptr.vmem [resolvable:$true] %s57_s24 }
  0x1e   :  { %s1767_s3 = scalar_lea.vmem %s58_s24, 2048  ;;  %p1772_p11 = scmp.lt.s32.totalorder %s58_s24, %s58_s24 }
  0x1f   :  { %p1768_p10 = scmp.ne.s32.totalorder %s58_s24, %s1767_s3  ;;  %p1773_p12 = scmp.lt.s32.totalorder %s1767_s3, %s1767_s3 }
  0x21   :  { %p1774_p13 = por %p1773_p12, %p1772_p11 }
  0x23   :  { %p1775_p0 = pnand %p1774_p13, %p1768_p10 }
  0x25   :  { %1778 = shalt.err (!%p1775_p0)
}
  0x26   :  { %s1790_s25 = smov 64   ;;  %s1791_s26 = smov 4  }
  0x27   :  { %63 = dma.hbm_to_vmem [thread:$0]  %s1986_s5, 2048, %s58_s24, [#allocation6], %s1790_s25, %s1790_s25, %s1791_s26  }
  0x28   :  { %1779 = dma.done.wait [#allocation4], 4096  }
  0x29   :  { %1780 = vsyncadd [#allocation4], 4294963200 }
  0x2a   :  { %1781 = dma.done.wait [#allocation6], 10240  }
  0x2b   :  { %1782 = vsyncadd [#allocation6], 4294957056  ;;  %v1792_v1 = vmov 0   ;;  %v1539_v2 = vld [vmem:[#allocation3 + $0xe4] ss:$16 sps:$4 sm:$0xff]   ;;  %vm1794_vm0 = vmmov 0  }
  0x2c   :  { %335 = vmatprep.mubr.bf16.mxu0 %v1792_v1  ;;  %376 = vmatprep.mubr.bf16.mxu1 %v1792_v1  ;;  %v1541_v3 = vld [vmem:[#allocation3 + $0xec] ss:$16 sps:$4 sm:$0xff]   ;;  %v1543_v4 = vld [vmem:[#allocation3 + $0xe0] ss:$16 sps:$4 sm:$0xff]   ;;  %v1544_v5 = vld [vmem:[#allocation3 + $0xe8] ss:$16 sps:$4 sm:$0xff]  }
  0x2d   :  { %303 = vmatprep.subr.bf16.mxu0 %v1539_v2  ;;  %344 = vmatprep.subr.bf16.mxu1 %v1541_v3  ;;  %v1545_v6 = vld [vmem:[#allocation3 + $0xc4] ss:$16 sps:$4 sm:$0xff]   ;;  %v1547_v7 = vld [vmem:[#allocation3 + $0xcc] ss:$16 sps:$4 sm:$0xff]   ;;  %v1549_v8 = vld [vmem:[#allocation3 + $0xc0] ss:$16 sps:$4 sm:$0xff]  }
  0x2e   :  { %304 = vmatpush1.bf16.msra.mxu0 %v1543_v4  ;;  %345 = vmatpush1.bf16.msra.mxu1 %v1544_v5  ;;  %v1550_v9 = vld [vmem:[#allocation3 + $0xc8] ss:$16 sps:$4 sm:$0xff]   ;;  %v1551_v10 = vld [vmem:[#allocation3 + $0xa4] ss:$16 sps:$4 sm:$0xff]   ;;  %v1553_v11 = vld [vmem:[#allocation3 + $0xac] ss:$16 sps:$4 sm:$0xff]  }
  0x2f   :  { %305 = vmatprep.subr.bf16.mxu0 %v1545_v6  ;;  %346 = vmatprep.subr.bf16.mxu1 %v1547_v7  ;;  %v1555_v12 = vld [vmem:[#allocation3 + $0xa0] ss:$16 sps:$4 sm:$0xff]   ;;  %v1556_v13 = vld [vmem:[#allocation3 + $0xa8] ss:$16 sps:$4 sm:$0xff]   ;;  %v1557_v14 = vld [vmem:[#allocation3 + $0x84] ss:$16 sps:$4 sm:$0xff]  }
  0x30   :  { %v1559_v15 = vld [vmem:[#allocation3 + $0x8c] ss:$16 sps:$4 sm:$0xff]   ;;  %v1561_v16 = vld [vmem:[#allocation3 + $0x80] ss:$16 sps:$4 sm:$0xff]   ;;  %v1562_v17 = vld [vmem:[#allocation3 + $0x88] ss:$16 sps:$4 sm:$0xff]  }
  0x31   :  { %v1563_v18 = vld [vmem:[#allocation3 + $0x64] ss:$16 sps:$4 sm:$0xff]   ;;  %v1565_v19 = vld [vmem:[#allocation3 + $0x6c] ss:$16 sps:$4 sm:$0xff]   ;;  %v1567_v20 = vld [vmem:[#allocation3 + $0x60] ss:$16 sps:$4 sm:$0xff]  }
  0x32   :  { %306 = vmatpush1.bf16.msra.mxu0 %v1549_v8  ;;  %347 = vmatpush1.bf16.msra.mxu1 %v1550_v9  ;;  %v1568_v21 = vld [vmem:[#allocation3 + $0x68] ss:$16 sps:$4 sm:$0xff]   ;;  %v1569_v22 = vld [vmem:[#allocation3 + $0x44] ss:$16 sps:$4 sm:$0xff]   ;;  %v1571_v23 = vld [vmem:[#allocation3 + $0x4c] ss:$16 sps:$4 sm:$0xff]  }
  0x33   :  { %307 = vmatprep.subr.bf16.mxu0 %v1551_v10  ;;  %348 = vmatprep.subr.bf16.mxu1 %v1553_v11  ;;  %v1573_v24 = vld [vmem:[#allocation3 + $0x40] ss:$16 sps:$4 sm:$0xff]   ;;  %v1574_v25 = vld [vmem:[#allocation3 + $0x48] ss:$16 sps:$4 sm:$0xff]   ;;  %v1575_v26 = vld [vmem:[#allocation3 + $0x24] ss:$16 sps:$4 sm:$0xff]  }
  0x34   :  { %v1577_v27 = vld [vmem:[#allocation3 + $0x2c] ss:$16 sps:$4 sm:$0xff]   ;;  %v1579_v28 = vld [vmem:[#allocation3 + $0x20] ss:$16 sps:$4 sm:$0xff]   ;;  %v1580_v29 = vld [vmem:[#allocation3 + $0x28] ss:$16 sps:$4 sm:$0xff]  }
  0x35   :  { %v1581_v30 = vld [vmem:[#allocation3 + $0x4] ss:$16 sps:$4 sm:$0xff]   ;;  %v1583_v31 = vld [vmem:[#allocation3 + $0xc] ss:$16 sps:$4 sm:$0xff]   ;;  %v1585_v32 = vld [vmem:[#allocation3] ss:$16 sps:$4 sm:$0xff]  }
  0x36   :  { %308 = vmatpush1.bf16.msra.mxu0 %v1555_v12  ;;  %349 = vmatpush1.bf16.msra.mxu1 %v1556_v13  ;;  %v1586_v33 = vld [vmem:[#allocation3 + $0x8] ss:$16 sps:$4 sm:$0xff]   ;;  %v1589_v34 = vld [vmem:[#allocation5 + $0x74] ss:$8 sps:$4 sm:$0xff]   ;;  %v1595_v39 = vld [vmem:[#allocation5 + $0x64] ss:$8 sps:$4 sm:$0xff]  }
  0x37   :  { %309 = vmatprep.subr.bf16.mxu0 %v1557_v14  ;;  %350 = vmatprep.subr.bf16.mxu1 %v1559_v15  ;;  %v1592_v35 = vld [vmem:[#allocation5 + $0x174] ss:$8 sps:$4 sm:$0xff]   ;;  %v1587_v37 = vld [vmem:[#allocation5 + $0x70] ss:$8 sps:$4 sm:$0xff]   ;;  %v1598_v40 = vld [vmem:[#allocation5 + $0x164] ss:$8 sps:$4 sm:$0xff]  }
  0x38   :  { %v88_v36 = vld [vmem:[%s1981_s0] sm:$0xf]  ;;  %v1590_v38 = vld [vmem:[#allocation5 + $0x170] ss:$8 sps:$4 sm:$0xff]   ;;  %v1607_v47 = vld [vmem:[#allocation5 + $0x44] ss:$8 sps:$4 sm:$0xff]  }
  0x39   :  { %v1593_v41 = vld [vmem:[#allocation5 + $0x60] ss:$8 sps:$4 sm:$0xff]   ;;  %v1601_v43 = vld [vmem:[#allocation5 + $0x54] ss:$8 sps:$4 sm:$0xff]   ;;  %v1599_v45 = vld [vmem:[#allocation5 + $0x50] ss:$8 sps:$4 sm:$0xff]  }
  0x3a   :  { %310 = vmatpush1.bf16.msra.mxu0 %v1561_v16  ;;  %351 = vmatpush1.bf16.msra.mxu1 %v1562_v17  ;;  %v1596_v42 = vld [vmem:[#allocation5 + $0x160] ss:$8 sps:$4 sm:$0xff]   ;;  %v1604_v44 = vld [vmem:[#allocation5 + $0x154] ss:$8 sps:$4 sm:$0xff]   ;;  %v1602_v46 = vld [vmem:[#allocation5 + $0x150] ss:$8 sps:$4 sm:$0xff]  }
  0x3b   :  { %311 = vmatprep.subr.bf16.mxu0 %v1563_v18  ;;  %352 = vmatprep.subr.bf16.mxu1 %v1565_v19  ;;  %v1610_v48 = vld [vmem:[#allocation5 + $0x144] ss:$8 sps:$4 sm:$0xff]   ;;  %v1605_v49 = vld [vmem:[#allocation5 + $0x40] ss:$8 sps:$4 sm:$0xff]   ;;  %v1613_v51 = vld [vmem:[#allocation5 + $0x34] ss:$8 sps:$4 sm:$0xff]  }
  0x3c   :  { %v1608_v50 = vld [vmem:[#allocation5 + $0x140] ss:$8 sps:$4 sm:$0xff]   ;;  %v1616_v52 = vld [vmem:[#allocation5 + $0x134] ss:$8 sps:$4 sm:$0xff]   ;;  %v1611_v53 = vld [vmem:[#allocation5 + $0x30] ss:$8 sps:$4 sm:$0xff]  }
  0x3d   :  { %v1614_v54 = vld [vmem:[#allocation5 + $0x130] ss:$8 sps:$4 sm:$0xff]   ;;  %v1619_v55 = vld [vmem:[#allocation5 + $0x24] ss:$8 sps:$4 sm:$0xff]   ;;  %v1617_v57 = vld [vmem:[#allocation5 + $0x20] ss:$8 sps:$4 sm:$0xff]  }
  0x3e   :  { %312 = vmatpush1.bf16.msra.mxu0 %v1567_v20  ;;  %353 = vmatpush1.bf16.msra.mxu1 %v1568_v21  ;;  %v1622_v56 = vld [vmem:[#allocation5 + $0x124] ss:$8 sps:$4 sm:$0xff]   ;;  %v1620_v58 = vld [vmem:[#allocation5 + $0x120] ss:$8 sps:$4 sm:$0xff]   ;;  %v1625_v59 = vld [vmem:[#allocation5 + $0x14] ss:$8 sps:$4 sm:$0xff]  }
  0x3f   :  { %313 = vmatprep.subr.bf16.mxu0 %v1569_v22  ;;  %354 = vmatprep.subr.bf16.mxu1 %v1571_v23  ;;  %v1628_v60 = vld [vmem:[#allocation5 + $0x114] ss:$8 sps:$4 sm:$0xff]   ;;  %v1623_v61 = vld [vmem:[#allocation5 + $0x10] ss:$8 sps:$4 sm:$0xff]   ;;  %v1631_v63 = vld [vmem:[#allocation5 + $0x4] ss:$8 sps:$4 sm:$0xff]  }
  0x40   :  { %v1626_v62 = vld [vmem:[#allocation5 + $0x110] ss:$8 sps:$4 sm:$0xff]   ;;  %v1634_v0 = vld [vmem:[#allocation5 + $0x104] ss:$8 sps:$4 sm:$0xff]   ;;  %v1629_v1 = vld [vmem:[#allocation5] ss:$8 sps:$4 sm:$0xff]  }
  0x41   :  { %v1632_v2 = vld [vmem:[#allocation5 + $0x100] ss:$8 sps:$4 sm:$0xff]   ;;  %v1637_v3 = vld [vmem:[#allocation5 + $0xf4] ss:$8 sps:$4 sm:$0xff]   ;;  %v1635_v5 = vld [vmem:[#allocation5 + $0xf0] ss:$8 sps:$4 sm:$0xff]  }
  0x42   :  { %314 = vmatpush1.bf16.msra.mxu0 %v1573_v24  ;;  %355 = vmatpush1.bf16.msra.mxu1 %v1574_v25  ;;  %v1640_v4 = vld [vmem:[#allocation5 + $0x1f4] ss:$8 sps:$4 sm:$0xff]   ;;  %v1638_v6 = vld [vmem:[#allocation5 + $0x1f0] ss:$8 sps:$4 sm:$0xff]   ;;  %v1643_v7 = vld [vmem:[#allocation5 + $0xe4] ss:$8 sps:$4 sm:$0xff]  }
  0x43   :  { %315 = vmatprep.subr.bf16.mxu0 %v1575_v26  ;;  %356 = vmatprep.subr.bf16.mxu1 %v1577_v27  ;;  %v1646_v8 = vld [vmem:[#allocation5 + $0x1e4] ss:$8 sps:$4 sm:$0xff]   ;;  %v1641_v9 = vld [vmem:[#allocation5 + $0xe0] ss:$8 sps:$4 sm:$0xff]   ;;  %v1649_v11 = vld [vmem:[#allocation5 + $0xd4] ss:$8 sps:$4 sm:$0xff]  }
  0x44   :  { %v1644_v10 = vld [vmem:[#allocation5 + $0x1e0] ss:$8 sps:$4 sm:$0xff]   ;;  %v1652_v12 = vld [vmem:[#allocation5 + $0x1d4] ss:$8 sps:$4 sm:$0xff]   ;;  %v1647_v13 = vld [vmem:[#allocation5 + $0xd0] ss:$8 sps:$4 sm:$0xff]  }
  0x45   :  { %v1650_v14 = vld [vmem:[#allocation5 + $0x1d0] ss:$8 sps:$4 sm:$0xff]   ;;  %v1655_v15 = vld [vmem:[#allocation5 + $0xc4] ss:$8 sps:$4 sm:$0xff]   ;;  %v1653_v17 = vld [vmem:[#allocation5 + $0xc0] ss:$8 sps:$4 sm:$0xff]  }
  0x46   :  { %316 = vmatpush1.bf16.msra.mxu0 %v1579_v28  ;;  %357 = vmatpush1.bf16.msra.mxu1 %v1580_v29  ;;  %v1658_v16 = vld [vmem:[#allocation5 + $0x1c4] ss:$8 sps:$4 sm:$0xff]   ;;  %v1656_v18 = vld [vmem:[#allocation5 + $0x1c0] ss:$8 sps:$4 sm:$0xff]   ;;  %v1661_v19 = vld [vmem:[#allocation5 + $0xb4] ss:$8 sps:$4 sm:$0xff]  }
  0x47   :  { %317 = vmatprep.subr.bf16.mxu0 %v1581_v30  ;;  %358 = vmatprep.subr.bf16.mxu1 %v1583_v31  ;;  %v1664_v20 = vld [vmem:[#allocation5 + $0x1b4] ss:$8 sps:$4 sm:$0xff]   ;;  %v1659_v21 = vld [vmem:[#allocation5 + $0xb0] ss:$8 sps:$4 sm:$0xff]   ;;  %v1667_v23 = vld [vmem:[#allocation5 + $0xa4] ss:$8 sps:$4 sm:$0xff]  }
  0x48   :  { %v1662_v22 = vld [vmem:[#allocation5 + $0x1b0] ss:$8 sps:$4 sm:$0xff]   ;;  %v1670_v24 = vld [vmem:[#allocation5 + $0x1a4] ss:$8 sps:$4 sm:$0xff]   ;;  %v1665_v25 = vld [vmem:[#allocation5 + $0xa0] ss:$8 sps:$4 sm:$0xff]  }
  0x49   :  { %v1668_v26 = vld [vmem:[#allocation5 + $0x1a0] ss:$8 sps:$4 sm:$0xff]   ;;  %v1673_v27 = vld [vmem:[#allocation5 + $0x94] ss:$8 sps:$4 sm:$0xff]   ;;  %v1671_v29 = vld [vmem:[#allocation5 + $0x90] ss:$8 sps:$4 sm:$0xff]  }
  0x4a   :  { %318 = vmatpush1.bf16.msra.mxu0 %v1585_v32  ;;  %359 = vmatpush1.bf16.msra.mxu1 %v1586_v33  ;;  %v1676_v28 = vld [vmem:[#allocation5 + $0x194] ss:$8 sps:$4 sm:$0xff]   ;;  %v1674_v30 = vld [vmem:[#allocation5 + $0x190] ss:$8 sps:$4 sm:$0xff]   ;;  %v1679_v31 = vld [vmem:[#allocation5 + $0x84] ss:$8 sps:$4 sm:$0xff]  }
  0x4b   :  { %789 = vmatprep.subr.bf16.mxu0 %v1589_v34  ;;  %830 = vmatprep.subr.bf16.mxu1 %v1592_v35  ;;  %v1682_v32 = vld [vmem:[#allocation5 + $0x184] ss:$8 sps:$4 sm:$0xff]   ;;  %v1677_v33 = vld [vmem:[#allocation5 + $0x80] ss:$8 sps:$4 sm:$0xff]   ;;  %v1683_v35 = vld [vmem:[#allocation7 + $0x78] sm:$0xff]   ;;  %vm1288_vm1 = vcmask 523264  }
  0x4c   :  { %v1680_v34 = vld [vmem:[#allocation5 + $0x180] ss:$8 sps:$4 sm:$0xff]   ;;  %vm1305_vm2 = vcmask 7168  }
  0x4d   :  { %336 = vmatmul.mubr.bf16.vlgmr.msra.gmra.mxu0 %v88_v36  ;;  %377 = vmatmul.mubr.bf16.vlgmr.msra.gmra.mxu1 %v88_v36  ;;  %v123_v36 = vlaneseq }
  0x4e   :  { %790 = vmatpush1.bf16.msra.mxu0 %v1587_v37  ;;  %831 = vmatpush1.bf16.msra.mxu1 %v1590_v38 }
  0x4f   :  { %791 = vmatprep.subr.bf16.mxu0 %v1595_v39  ;;  %832 = vmatprep.subr.bf16.mxu1 %v1598_v40  ;;  %v1880_v37 = vshrl.u32 %v123_v36, 7  ;;  %v121_v40 = vld [vmem:[%s1983_s2] sm:$0xf] }
  0x51   :  { %v125_v38 = vsub.s32 0, %v1880_v37  ;;  %v133_v39 = vsub.s32 2, %v1880_v37 }
  0x52   :  { %792 = vmatpush1.bf16.msra.mxu0 %v1593_v41  ;;  %833 = vmatpush1.bf16.msra.mxu1 %v1596_v42  ;;  %v129_v41 = vsub.s32 1, %v1880_v37  ;;  %v137_v42 = vsub.s32 3, %v1880_v37  ;;  %v1704_v37 = vld [vmem:[%s1988_s7 + $0x10] sm:$0xff]  }
  0x53   :  { %793 = vmatprep.subr.bf16.mxu0 %v1601_v43  ;;  %834 = vmatprep.subr.bf16.mxu1 %v1604_v44  ;;  %v126_v43 = vrot.slane %v121_v40, %v125_v38  ;;  %v134_v44 = vrot.slane %v121_v40, %v133_v39 }
  0x56   :  { %794 = vmatpush1.bf16.msra.mxu0 %v1599_v45  ;;  %835 = vmatpush1.bf16.msra.mxu1 %v1602_v46  ;;  %v130_v45 = vrot.slane %v121_v40, %v129_v41  ;;  %v138_v46 = vrot.slane %v121_v40, %v137_v42 }
  0x57   :  { %795 = vmatprep.subr.bf16.mxu0 %v1607_v47  ;;  %836 = vmatprep.subr.bf16.mxu1 %v1610_v48 }
  0x5a   :  { %796 = vmatpush1.bf16.msra.mxu0 %v1605_v49  ;;  %837 = vmatpush1.bf16.msra.mxu1 %v1608_v50 }
  0x5b   :  { %797 = vmatprep.subr.bf16.mxu0 %v1613_v51  ;;  %838 = vmatprep.subr.bf16.mxu1 %v1616_v52 }
  0x5e   :  { %798 = vmatpush1.bf16.msra.mxu0 %v1611_v53  ;;  %839 = vmatpush1.bf16.msra.mxu1 %v1614_v54 }
  0x5f   :  { %799 = vmatprep.subr.bf16.mxu0 %v1619_v55  ;;  %840 = vmatprep.subr.bf16.mxu1 %v1622_v56 }
  0x62   :  { %800 = vmatpush1.bf16.msra.mxu0 %v1617_v57  ;;  %841 = vmatpush1.bf16.msra.mxu1 %v1620_v58 }
  0x63   :  { %801 = vmatprep.subr.bf16.mxu0 %v1625_v59  ;;  %842 = vmatprep.subr.bf16.mxu1 %v1628_v60 }
  0x66   :  { %802 = vmatpush1.bf16.msra.mxu0 %v1623_v61  ;;  %843 = vmatpush1.bf16.msra.mxu1 %v1626_v62 }
  0x67   :  { %803 = vmatprep.subr.bf16.mxu0 %v1631_v63  ;;  %844 = vmatprep.subr.bf16.mxu1 %v1634_v0 }
  0x6a   :  { %804 = vmatpush1.bf16.msra.mxu0 %v1629_v1  ;;  %845 = vmatpush1.bf16.msra.mxu1 %v1632_v2  ;;  %v1684_v2 = vld [vmem:[#allocation7 + $0x38] sm:$0xff]  }
  0x6b   :  { %805 = vmatprep.subr.bf16.mxu0 %v1637_v3  ;;  %846 = vmatprep.subr.bf16.mxu1 %v1640_v4  ;;  %v1685_v4 = vld [vmem:[#allocation7 + $0x70] sm:$0xff]  }
  0x6e   :  { %806 = vmatpush2.bf16.msra.mxu0 %v1635_v5  ;;  %847 = vmatpush2.bf16.msra.mxu1 %v1638_v6  ;;  %v1686_v5 = vld [vmem:[#allocation7 + $0x30] sm:$0xff]   ;;  %v1687_v6 = vld [vmem:[#allocation7 + $0x68] sm:$0xff]  }
  0x6f   :  { %807 = vmatprep.subr.bf16.mxu0 %v1643_v7  ;;  %848 = vmatprep.subr.bf16.mxu1 %v1646_v8  ;;  %v1688_v7 = vld [vmem:[#allocation7 + $0x28] sm:$0xff]   ;;  %v1689_v8 = vld [vmem:[#allocation7 + $0x60] sm:$0xff]  }
  0x72   :  { %808 = vmatpush2.bf16.msra.mxu0 %v1641_v9  ;;  %849 = vmatpush2.bf16.msra.mxu1 %v1644_v10  ;;  %v1690_v9 = vld [vmem:[#allocation7 + $0x20] sm:$0xff]   ;;  %v1691_v10 = vld [vmem:[#allocation7 + $0x58] sm:$0xff]  }
  0x73   :  { %809 = vmatprep.subr.bf16.mxu0 %v1649_v11  ;;  %850 = vmatprep.subr.bf16.mxu1 %v1652_v12  ;;  %v1692_v11 = vld [vmem:[#allocation7 + $0x18] sm:$0xff]   ;;  %v1693_v12 = vld [vmem:[#allocation7 + $0x50] sm:$0xff]  }
  0x76   :  { %810 = vmatpush2.bf16.msra.mxu0 %v1647_v13  ;;  %851 = vmatpush2.bf16.msra.mxu1 %v1650_v14  ;;  %v1694_v13 = vld [vmem:[#allocation7 + $0x10] sm:$0xff]   ;;  %v1695_v14 = vld [vmem:[#allocation7 + $0x48] sm:$0xff]  }
  0x77   :  { %811 = vmatprep.subr.bf16.mxu0 %v1655_v15  ;;  %852 = vmatprep.subr.bf16.mxu1 %v1658_v16  ;;  %v1696_v15 = vld [vmem:[#allocation7 + $0x8] sm:$0xff]   ;;  %v1697_v16 = vld [vmem:[#allocation7 + $0x40] sm:$0xff]  }
  0x7a   :  { %812 = vmatpush2.bf16.msra.mxu0 %v1653_v17  ;;  %853 = vmatpush2.bf16.msra.mxu1 %v1656_v18  ;;  %v1698_v17 = vld [vmem:[#allocation7] sm:$0xff]   ;;  %v1699_v18 = vld [vmem:[%s1988_s7 + $0x38] sm:$0xff]  }
  0x7b   :  { %813 = vmatprep.subr.bf16.mxu0 %v1661_v19  ;;  %854 = vmatprep.subr.bf16.mxu1 %v1664_v20  ;;  %v1793_v19 = vmov 0.0   ;;  %v1700_v20 = vld [vmem:[%s1988_s7 + $0x30] sm:$0xff]  }
  0x7e   :  { %814 = vmatpush2.bf16.msra.mxu0 %v1659_v21  ;;  %855 = vmatpush2.bf16.msra.mxu1 %v1662_v22  ;;  %v1701_v21 = vld [vmem:[%s1988_s7 + $0x28] sm:$0xff]   ;;  %v1702_v22 = vld [vmem:[%s1988_s7 + $0x20] sm:$0xff]  }
  0x7f   :  { %815 = vmatprep.subr.bf16.mxu0 %v1667_v23  ;;  %856 = vmatprep.subr.bf16.mxu1 %v1670_v24  ;;  %v1703_v23 = vld [vmem:[%s1988_s7 + $0x18] sm:$0xff]   ;;  %v457_v24 = vld [vmem:[%s1985_s4] sm:$0x3] }
  0x82   :  { %816 = vmatpush2.bf16.msra.mxu0 %v1665_v25  ;;  %857 = vmatpush2.bf16.msra.mxu1 %v1668_v26  ;;  %v462_v25 = vrot.slane %v457_v24, %v125_v38  ;;  %v466_v26 = vrot.slane %v457_v24, %v129_v41  ;;  %v1705_v38 = vld [vmem:[%s1988_s7 + $0x8] sm:$0xff]   ;;  %v1706_v41 = vld [vmem:[%s1988_s7] sm:$0xff]  }
  0x83   :  { %817 = vmatprep.subr.bf16.mxu0 %v1673_v27  ;;  %858 = vmatprep.subr.bf16.mxu1 %v1676_v28 }
  0x86   :  { %818 = vmatpush2.bf16.msra.mxu0 %v1671_v29  ;;  %859 = vmatpush2.bf16.msra.mxu1 %v1674_v30 }
  0x87   :  { %819 = vmatprep.subr.bf16.mxu0 %v1679_v31  ;;  %860 = vmatprep.subr.bf16.mxu1 %v1682_v32 }
  0x8a   :  { %820 = vmatpush2.bf16.msra.mxu0 %v1677_v33  ;;  %861 = vmatpush2.bf16.msra.mxu1 %v1680_v34 }
  0x8b   :  { %1447 = vmatprep.subr.bf16.mxu0 %v1683_v35  ;;  %1487 = vmatprep.subr.bf16.mxu1 %v1793_v19 }
 0x10d   :  { %v337_v47 = vpop.f32.mrf.mxu0  ;;  %v378_v48 = vpop.f32.mrf.mxu1 }
 0x10e   :  { %v338_v49 = vadd.f32 %v337_v47, %v126_v43  ;;  %v379_v50 = vadd.f32 %v378_v48, %v134_v44  ;;  %v1708_v47 = vld [vmem:[%s1990_s9 + $0x30] sm:$0xff]   ;;  %v1709_v48 = vld [vmem:[%s1990_s9 + $0x28] sm:$0xff]  }
 0x10f   :  { %v339_v51 = vpop.f32.mrf.mxu0  ;;  %v380_v52 = vpop.f32.mrf.mxu1 }
 0x110   :  { %v387_v53 = vmax.f32 %v379_v50, 0.0  ;;  %v340_v54 = vadd.f32 %v339_v51, %v130_v45  ;;  %v381_v55 = vadd.f32 %v380_v52, %v138_v46  ;;  %v385_v56 = vmax.f32 %v338_v49, 0.0  ;;  %v1707_v46 = vld [vmem:[%s1990_s9 + $0x38] sm:$0xff]   ;;  %v1710_v49 = vld [vmem:[%s1990_s9 + $0x20] sm:$0xff]   ;;  %v1712_v51 = vld [vmem:[%s1990_s9 + $0x10] sm:$0xff]  }
 0x111   :  { %v341_v57 = vpop.f32.mrf.mxu0  ;;  %v382_v58 = vpop.f32.mrf.mxu1  ;;  %v1711_v50 = vld [vmem:[%s1990_s9 + $0x18] sm:$0xff]  }
 0x112   :  { %v386_v59 = vmax.f32 %v340_v54, 0.0  ;;  %v388_v60 = vmax.f32 %v381_v55, 0.0  ;;  %v391_v61 = vpack.c.bf16 %v387_v53, %v387_v53  ;;  %v389_v3 = vpack.c.bf16 %v385_v56, %v385_v56  ;;  %v1409_v53 = vld [vmem:[%s1987_s6] ss:$0 sm:$0xff] }
 0x113   :  { %v342_v62 = vpop.f32.mrf.mxu0  ;;  %v383_v63 = vpop.f32.mrf.mxu1 }
 0x114   :  { %v390_v0 = vpack.c.bf16 %v386_v59, %v386_v59  ;;  %v392_v1 = vpack.c.bf16 %v388_v60, %v388_v60  ;;  %v1714_v62 = vld [vmem:[%s1990_s9] sm:$0xff]  }
 0x115   :  { %v1426_v63 = vld [vmem:[%s1989_s8] ss:$0 sm:$0xff] }
 0x116   :  { %821 = vmatprep.mubr.bf16.mxu0 %v390_v0  ;;  %862 = vmatprep.mubr.bf16.mxu1 %v392_v1 }
 0x117   :  { %822 = vmatmul.mubr.bf16.vlgmr.msra.gmra.mxu0 %v389_v3  ;;  %863 = vmatmul.mubr.bf16.vlgmr.msra.gmra.mxu1 %v391_v61  ;;  %v1713_v61 = vld [vmem:[%s1990_s9 + $0x8] sm:$0xff]  }
 0x118   :  { %1448 = vmatpush3.bf16.msra.mxu0 %v1684_v2  ;;  %1488 = vmatpush3.bf16.msra.mxu1 %v1699_v18 }
 0x119   :  { %1449 = vmatprep.subr.bf16.mxu0 %v1685_v4  ;;  %1489 = vmatprep.subr.bf16.mxu1 %v1793_v19 }
 0x11a   :  { %1503 = vmatprep.mubr.msk.bf16.mxu1 %vm1794_vm0, %v1793_v19 }
 0x11c   :  { %1450 = vmatpush3.bf16.msra.mxu0 %v1686_v5  ;;  %1490 = vmatpush3.bf16.msra.mxu1 %v1700_v20 }
 0x11d   :  { %1451 = vmatprep.subr.bf16.mxu0 %v1687_v6  ;;  %1491 = vmatprep.subr.bf16.mxu1 %v1793_v19 }
 0x120   :  { %1452 = vmatpush3.bf16.msra.mxu0 %v1688_v7  ;;  %1492 = vmatpush3.bf16.msra.mxu1 %v1701_v21  ;;  %v1435_v7 = vld [vmem:[%s1991_s10] ss:$0 sm:$0xff] }
 0x121   :  { %1453 = vmatprep.subr.bf16.mxu0 %v1689_v8  ;;  %1493 = vmatprep.subr.bf16.mxu1 %v1793_v19 }
 0x124   :  { %1454 = vmatpush3.bf16.msra.mxu0 %v1690_v9  ;;  %1494 = vmatpush3.bf16.msra.mxu1 %v1702_v22 }
 0x125   :  { %1455 = vmatprep.subr.bf16.mxu0 %v1691_v10  ;;  %1495 = vmatprep.subr.bf16.mxu1 %v1793_v19 }
 0x128   :  { %1456 = vmatpush3.bf16.msra.mxu0 %v1692_v11  ;;  %1496 = vmatpush3.bf16.msra.mxu1 %v1703_v23 }
 0x129   :  { %1457 = vmatprep.subr.bf16.mxu0 %v1693_v12  ;;  %1497 = vmatprep.subr.bf16.mxu1 %v1793_v19 }
 0x12c   :  { %1458 = vmatpush3.bf16.msra.mxu0 %v1694_v13  ;;  %1498 = vmatpush3.bf16.msra.mxu1 %v1704_v37 }
 0x12d   :  { %1459 = vmatprep.subr.bf16.mxu0 %v1695_v14  ;;  %1499 = vmatprep.subr.bf16.mxu1 %v1793_v19 }
 0x130   :  { %1460 = vmatpush3.bf16.msra.mxu0 %v1696_v15  ;;  %1500 = vmatpush3.bf16.msra.mxu1 %v1705_v38  ;;  %v1444_v15 = vld [vmem:[%s1992_s11] ss:$0 sm:$0xff] }
 0x131   :  { %1461 = vmatprep.subr.bf16.mxu0 %v1697_v16  ;;  %1501 = vmatprep.subr.bf16.mxu1 %v1793_v19 }
 0x134   :  { %1462 = vmatpush3.bf16.msra.mxu0 %v1698_v17  ;;  %1502 = vmatpush3.bf16.msra.mxu1 %v1706_v41 }
 0x135   :  { %1507 = vmatprep.subr.bf16.mxu0 %v1793_v19 }
 0x1d7   :  { %v823_v27 = vpop.f32.mrf.mxu0  ;;  %v864_v28 = vpop.f32.mrf.mxu1 }
 0x1d8   :  { %v824_v29 = vadd.f32 %v823_v27, %v462_v25 }
 0x1d9   :  { %v825_v30 = vpop.f32.mrf.mxu0  ;;  %v866_v31 = vpop.f32.mrf.mxu1 }
 0x1da   :  { %v865_v32 = vadd.f32 %v864_v28, %v824_v29  ;;  %v826_v33 = vadd.f32 %v825_v30, %v466_v26 }
 0x1db   :  { %v827_v34 = vpop.f32.mrf.mxu0  ;;  %v868_v35 = vpop.f32.mrf.mxu1 }
 0x1dc   :  { %v867_v36 = vadd.f32 %v866_v31, %v826_v33  ;;  %v871_v39 = vmax.f32 %v865_v32, 0.0 }
 0x1dd   :  { %v828_v40 = vpop.f32.mrf.mxu0  ;;  %v869_v42 = vpop.f32.mrf.mxu1 }
 0x1de   :  { %v872_v43 = vmax.f32 %v867_v36, 0.0  ;;  %v873_v45 = vpack.c.bf16 %v871_v39, %v871_v39 }
 0x1e0   :  { %v874_v44 = vpack.c.bf16 %v872_v43, %v872_v43 }
 0x1e2   :  { %1042 = vmatprep.mubr.bf16.mxu0 %v874_v44 }
 0x1e3   :  { %1043 = vmatmul.mubr.bf16.vlgmr.msra.gmra.mxu0 %v873_v45 }
 0x1e4   :  { %1523 = vmatprep.mubr.msk.bf16.mxu0 %vm1794_vm0, %v1793_v19  ;;  %1508 = vmatpush3.bf16.msra.mxu0 %v1707_v46 }
 0x1e5   :  { %1509 = vmatprep.subr.bf16.mxu0 %v1793_v19 }
 0x1e8   :  { %1510 = vmatpush3.bf16.msra.mxu0 %v1708_v47 }
 0x1e9   :  { %1511 = vmatprep.subr.bf16.mxu0 %v1793_v19 }
 0x1ec   :  { %1512 = vmatpush3.bf16.msra.mxu0 %v1709_v48 }
 0x1ed   :  { %1513 = vmatprep.subr.bf16.mxu0 %v1793_v19 }
 0x1f0   :  { %1514 = vmatpush3.bf16.msra.mxu0 %v1710_v49 }
 0x1f1   :  { %1515 = vmatprep.subr.bf16.mxu0 %v1793_v19 }
 0x1f4   :  { %1516 = vmatpush3.bf16.msra.mxu0 %v1711_v50 }
 0x1f5   :  { %1517 = vmatprep.subr.bf16.mxu0 %v1793_v19 }
 0x1f8   :  { %1518 = vmatpush3.bf16.msra.mxu0 %v1712_v51 }
 0x1f9   :  { %1519 = vmatprep.subr.bf16.mxu0 %v1793_v19 }
 0x1fc   :  { %1520 = vmatpush3.bf16.msra.mxu0 %v1713_v61 }
 0x1fd   :  { %1521 = vmatprep.subr.bf16.mxu0 %v1793_v19  ;;  %v1445_v19 = vld [vmem:[#allocation2] ss:$0 sm:$0xff] }
 0x200   :  { %1522 = vmatpush3.bf16.msra.mxu0 %v1714_v62 }
 0x2a3   :  { %v1463_v52 = vpop.f32.mrf.mxu0 }
 0x2a5   :  { %v1464_v54 = vpop.f32.mrf.mxu0 }
 0x2a6   :  { %v1465_v55 = vadd.f32 %v1464_v54, %v1463_v52 }
 0x2a7   :  { %v1466_v56 = vpop.f32.mrf.mxu0 }
 0x2a8   :  { %v1045_v57 = vadd.f32 %v1465_v55, %v1409_v53 }
 0x2a9   :  { %v1467_v58 = vpop.f32.mrf.mxu0 }
 0x2aa   :  { %v1050_v59 = vmax.f32 %v1045_v57, 0.0 }
 0x2ac   :  { %v1051_v60 = vpack.c.bf16 %v1050_v59, %v1050_v59 }
 0x2ae   :  { %1504 = vmatmul.mubr.bf16.vlgmr.msra.gmra.mxu1 %v1051_v60 }
 0x36e   :  { %v1157_v0 = vpop.f32.mrf.mxu1 }
 0x36f   :  { %v1158_v1 = vadd.f32 %v1426_v63, %v1157_v0 }
 0x370   :  { %v1505_v2 = vpop.f32.mrf.mxu1 }
 0x371   :  { %v1163_v3 = vmax.f32 %v1158_v1, 0.0 }
 0x372   :  { %v1160_v4 = vpop.f32.mrf.mxu1 }
 0x373   :  { %v1164_v5 = vpack.c.bf16 %v1163_v3, %v1163_v3 }
 0x374   :  { %v1506_v6 = vpop.f32.mrf.mxu1 }
 0x375   :  { %1524 = vmatmul.mubr.bf16.vlgmr.msra.gmra.mxu0 %v1164_v5 }
 0x435   :  { %v1270_v8 = vpop.f32.mrf.mxu0 }
 0x436   :  { %v1271_v9 = vadd.f32 %v1435_v7, %v1270_v8 }
 0x437   :  { %v1525_v10 = vpop.f32.mrf.mxu0 }
 0x438   :  { %v1276_v11 = vmax.f32 %v1271_v9, 0.0 }
 0x439   :  { %v1273_v12 = vpop.f32.mrf.mxu0 }
 0x43a   :  { %v1277_v13 = vpack.c.bf16 %v1276_v11, %v1276_v11 }
 0x43b   :  { %v1526_v14 = vpop.f32.mrf.mxu0 }
 0x43c   :  { %v1280_v16 = vunpack.c.l.bf16 %v1277_v13 }
 0x43e   :  { %v1287_v17 = vmul.f32 %v1444_v15, %v1280_v16 }
 0x440   :  { %v1289_v18 = vsel %vm1288_vm1, %v1287_v17, 0.0 }
 0x441   :  { %1290 = vadd.xlane.f32.xlu0 %v1289_v18 }
 0x4ca   :  { %v1291_v20 = vpop.xlane.xlu0 %1290 }
 0x4cb   :  { %v1298_v21 = vadd.f32 %v1445_v19, %v1291_v20 }
 0x4cd   :  { %v1446_v22 = vmul.f32 -1.442695, %v1298_v21 }
 0x4cf   :  { %1715 = vpow2.f32 %v1446_v22 }
 0x4dc   :  { %v1716_v23 = vpop.eup %1715 }
 0x4dd   :  { %v1302_v24 = vadd.f32 1.0, %v1716_v23 }
 0x4df   :  { %1717 = vrcp.f32 %v1302_v24 }
 0x4ec   :  { %v1718_v25 = vpop.eup %1717 }
 0x4ed   :  { %1306 = vst.msk [vmem:[%s1994_s13] sm:$0xff] %vm1305_vm2, %v1718_v25 }
 0x4ee   :  { %1311 = vsyncpa [#allocation4], 1 }
 0x4ef   :  { %1312 = vsyncpa [#allocation6], 1 }

// kernel: tpu_custom_call.1
= control target key start
LH: loop header
LB: loop body
LE: loop exit
PB: predicated region body
PF: predicated region fallthrough
CT: control target
= control target key end

     0   :  { %s1981_s0 = inlined_call_operand.vmem [shape: bf16[8,128], index: 0, kind: input, shape index: {}]   ;;  %s1982_s1 = inlined_call_operand.hbm [shape: bf16[128,512], index: 1, kind: input, shape index: {}]   ;;  %s1983_s2 = inlined_call_operand.vmem [shape: f32[1,512], index: 2, kind: input, shape index: {}]   ;;  %s1984_s3 = inlined_call_operand.hbm [shape: bf16[512,256], index: 3, kind: input, shape index: {}]   ;;  %s1985_s4 = inlined_call_operand.vmem [shape: f32[1,256], index: 4, kind: input, shape index: {}]   ;;  %s1986_s5 = inlined_call_operand.hbm [shape: bf16[256,128], index: 5, kind: input, shape index: {}]   ;;  %s1987_s6 = inlined_call_operand.vmem [shape: f32[1,128], index: 6, kind: input, shape index: {}]   ;;  %s1988_s7 = inlined_call_operand.vmem [shape: bf16[128,128], index: 7, kind: input, shape index: {}]   ;;  %s1989_s8 = inlined_call_operand.vmem [shape: f32[1,128], index: 8, kind: input, shape index: {}]   ;;  %s1990_s9 = inlined_call_operand.vmem [shape: bf16[128,64], index: 9, kind: input, shape index: {}]   ;;  %s1991_s10 = inlined_call_operand.vmem [shape: f32[1,64], index: 10, kind: input, shape index: {}]   ;;  %s1992_s11 = inlined_call_operand.vmem [shape: f32[1,64], index: 11, kind: input, shape index: {}]   ;;  %s1993_s12 = inlined_call_operand.<no memory space> [shape: f32[1,1], index: 12, kind: input, shape index: {}]   ;;  %s1994_s13 = inlined_call_operand.vmem [shape: f32[8,1], index: 13, kind: output, shape index: {}]  }
   0x1   :  { %v18_v0 = vstv %s1993_s12 }
   0x2   :  { %19 = vst [vmem:[#allocation2] sm:$0x1] %v18_v0 }
   0x3   :  { %20 = vsyncpa [#allocation4], 0 }
   0x4   :  { %21 = vsyncpa [#allocation6], 0  ;;  %s1783_s27 = smov [#allocation5]  }
   0x5   :  { %s43_s28 = sshll.u32 %s1783_s27, 4  ;;  %s44_s28 = int_to_ptr.vmem [resolvable:$true] %s43_s28 }
   0x6   :  { %s1727_s29 = scalar_lea.vmem %s44_s28, 8192  ;;  %p1732_p1 = scmp.lt.s32.totalorder %s44_s28, %s44_s28 }
   0x7   :  { %p1728_p0 = scmp.ne.s32.totalorder %s44_s28, %s1727_s29  ;;  %p1733_p2 = scmp.lt.s32.totalorder %s1727_s29, %s1727_s29 }
   0x9   :  { %p1734_p3 = por %p1733_p2, %p1732_p1 }
   0xb   :  { %p1735_p4 = pnand %p1734_p3, %p1728_p0 }
   0xd   :  { %1738 = shalt.err (!%p1735_p4)
}
   0xe   :  { %s1784_s30 = smov 128   ;;  %s1785_s14 = smov 8  }
   0xf   :  { %49 = dma.hbm_to_vmem [thread:$0]  %s1984_s3, 8192, %s44_s28, [#allocation6], %s1784_s30, %s1784_s30, %s1785_s14  }
  0x10   :  { %s1786_s12 = smov [#allocation3]  }
  0x11   :  { %s29_s17 = sshll.u32 %s1786_s12, 4  ;;  %s30_s17 = int_to_ptr.vmem [resolvable:$true] %s29_s17 }
  0x12   :  { %s1747_s18 = scalar_lea.vmem %s30_s17, 4096  ;;  %p1752_p6 = scmp.lt.s32.totalorder %s30_s17, %s30_s17 }
  0x13   :  { %p1748_p5 = scmp.ne.s32.totalorder %s30_s17, %s1747_s18  ;;  %p1753_p7 = scmp.lt.s32.totalorder %s1747_s18, %s1747_s18 }
  0x15   :  { %p1754_p8 = por %p1753_p7, %p1752_p6 }
  0x17   :  { %p1755_p9 = pnand %p1754_p8, %p1748_p5 }
  0x19   :  { %1758 = shalt.err (!%p1755_p9)
}
  0x1a   :  { %s1787_s19 = smov 256   ;;  %s1788_s20 = smov 16  }
  0x1b   :  { %35 = dma.hbm_to_vmem [thread:$0]  %s1982_s1, 4096, %s30_s17, [#allocation4], %s1787_s19, %s1787_s19, %s1788_s20  }
  0x1c   :  { %s1789_s23 = smov [#allocation7]  }
  0x1d   :  { %s57_s24 = sshll.u32 %s1789_s23, 4  ;;  %s58_s24 = int_to_ptr.vmem [resolvable:$true] %s57_s24 }
  0x1e   :  { %s1767_s3 = scalar_lea.vmem %s58_s24, 2048  ;;  %p1772_p11 = scmp.lt.s32.totalorder %s58_s24, %s58_s24 }
  0x1f   :  { %p1768_p10 = scmp.ne.s32.totalorder %s58_s24, %s1767_s3  ;;  %p1773_p12 = scmp.lt.s32.totalorder %s1767_s3, %s1767_s3 }
  0x21   :  { %p1774_p13 = por %p1773_p12, %p1772_p11 }
  0x23   :  { %p1775_p0 = pnand %p1774_p13, %p1768_p10 }
  0x25   :  { %1778 = shalt.err (!%p1775_p0)
}
  0x26   :  { %s1790_s25 = smov 64   ;;  %s1791_s26 = smov 4  }
  0x27   :  { %63 = dma.hbm_to_vmem [thread:$0]  %s1986_s5, 2048, %s58_s24, [#allocation6], %s1790_s25, %s1790_s25, %s1791_s26  }
  0x28   :  { %1779 = dma.done.wait [#allocation4], 4096  }
  0x29   :  { %1780 = vsyncadd [#allocation4], 4294963200 }
  0x2a   :  { %1781 = dma.done.wait [#allocation6], 10240  }
  0x2b   :  { %1782 = vsyncadd [#allocation6], 4294957056  ;;  %v1792_v1 = vmov 0   ;;  %v1539_v2 = vld [vmem:[#allocation3 + $0xe4] ss:$16 sps:$4 sm:$0xff]   ;;  %vm1794_vm0 = vmmov 0  }
  0x2c   :  { %335 = vmatprep.mubr.bf16.mxu0 %v1792_v1  ;;  %376 = vmatprep.mubr.bf16.mxu1 %v1792_v1  ;;  %v1541_v3 = vld [vmem:[#allocation3 + $0xec] ss:$16 sps:$4 sm:$0xff]   ;;  %v1543_v4 = vld [vmem:[#allocation3 + $0xe0] ss:$16 sps:$4 sm:$0xff]   ;;  %v1544_v5 = vld [vmem:[#allocation3 + $0xe8] ss:$16 sps:$4 sm:$0xff]  }
  0x2d   :  { %303 = vmatprep.subr.bf16.mxu0 %v1539_v2  ;;  %344 = vmatprep.subr.bf16.mxu1 %v1541_v3  ;;  %v1545_v6 = vld [vmem:[#allocation3 + $0xc4] ss:$16 sps:$4 sm:$0xff]   ;;  %v1547_v7 = vld [vmem:[#allocation3 + $0xcc] ss:$16 sps:$4 sm:$0xff]   ;;  %v1549_v8 = vld [vmem:[#allocation3 + $0xc0] ss:$16 sps:$4 sm:$0xff]  }
  0x2e   :  { %304 = vmatpush1.bf16.msra.mxu0 %v1543_v4  ;;  %345 = vmatpush1.bf16.msra.mxu1 %v1544_v5  ;;  %v1550_v9 = vld [vmem:[#allocation3 + $0xc8] ss:$16 sps:$4 sm:$0xff]   ;;  %v1551_v10 = vld [vmem:[#allocation3 + $0xa4] ss:$16 sps:$4 sm:$0xff]   ;;  %v1553_v11 = vld [vmem:[#allocation3 + $0xac] ss:$16 sps:$4 sm:$0xff]  }
  0x2f   :  { %305 = vmatprep.subr.bf16.mxu0 %v1545_v6  ;;  %346 = vmatprep.subr.bf16.mxu1 %v1547_v7  ;;  %v1555_v12 = vld [vmem:[#allocation3 + $0xa0] ss:$16 sps:$4 sm:$0xff]   ;;  %v1556_v13 = vld [vmem:[#allocation3 + $0xa8] ss:$16 sps:$4 sm:$0xff]   ;;  %v1557_v14 = vld [vmem:[#allocation3 + $0x84] ss:$16 sps:$4 sm:$0xff]  }
  0x30   :  { %v1559_v15 = vld [vmem:[#allocation3 + $0x8c] ss:$16 sps:$4 sm:$0xff]   ;;  %v1561_v16 = vld [vmem:[#allocation3 + $0x80] ss:$16 sps:$4 sm:$0xff]   ;;  %v1562_v17 = vld [vmem:[#allocation3 + $0x88] ss:$16 sps:$4 sm:$0xff]  }
  0x31   :  { %v1563_v18 = vld [vmem:[#allocation3 + $0x64] ss:$16 sps:$4 sm:$0xff]   ;;  %v1565_v19 = vld [vmem:[#allocation3 + $0x6c] ss:$16 sps:$4 sm:$0xff]   ;;  %v1567_v20 = vld [vmem:[#allocation3 + $0x60] ss:$16 sps:$4 sm:$0xff]  }
  0x32   :  { %306 = vmatpush1.bf16.msra.mxu0 %v1549_v8  ;;  %347 = vmatpush1.bf16.msra.mxu1 %v1550_v9  ;;  %v1568_v21 = vld [vmem:[#allocation3 + $0x68] ss:$16 sps:$4 sm:$0xff]   ;;  %v1569_v22 = vld [vmem:[#allocation3 + $0x44] ss:$16 sps:$4 sm:$0xff]   ;;  %v1571_v23 = vld [vmem:[#allocation3 + $0x4c] ss:$16 sps:$4 sm:$0xff]  }
  0x33   :  { %307 = vmatprep.subr.bf16.mxu0 %v1551_v10  ;;  %348 = vmatprep.subr.bf16.mxu1 %v1553_v11  ;;  %v1573_v24 = vld [vmem:[#allocation3 + $0x40] ss:$16 sps:$4 sm:$0xff]   ;;  %v1574_v25 = vld [vmem:[#allocation3 + $0x48] ss:$16 sps:$4 sm:$0xff]   ;;  %v1575_v26 = vld [vmem:[#allocation3 + $0x24] ss:$16 sps:$4 sm:$0xff]  }
  0x34   :  { %v1577_v27 = vld [vmem:[#allocation3 + $0x2c] ss:$16 sps:$4 sm:$0xff]   ;;  %v1579_v28 = vld [vmem:[#allocation3 + $0x20] ss:$16 sps:$4 sm:$0xff]   ;;  %v1580_v29 = vld [vmem:[#allocation3 + $0x28] ss:$16 sps:$4 sm:$0xff]  }
  0x35   :  { %v1581_v30 = vld [vmem:[#allocation3 + $0x4] ss:$16 sps:$4 sm:$0xff]   ;;  %v1583_v31 = vld [vmem:[#allocation3 + $0xc] ss:$16 sps:$4 sm:$0xff]   ;;  %v1585_v32 = vld [vmem:[#allocation3] ss:$16 sps:$4 sm:$0xff]  }
  0x36   :  { %308 = vmatpush1.bf16.msra.mxu0 %v1555_v12  ;;  %349 = vmatpush1.bf16.msra.mxu1 %v1556_v13  ;;  %v1586_v33 = vld [vmem:[#allocation3 + $0x8] ss:$16 sps:$4 sm:$0xff]   ;;  %v1589_v34 = vld [vmem:[#allocation5 + $0x74] ss:$8 sps:$4 sm:$0xff]   ;;  %v1595_v39 = vld [vmem:[#allocation5 + $0x64] ss:$8 sps:$4 sm:$0xff]  }
  0x37   :  { %309 = vmatprep.subr.bf16.mxu0 %v1557_v14  ;;  %350 = vmatprep.subr.bf16.mxu1 %v1559_v15  ;;  %v1592_v35 = vld [vmem:[#allocation5 + $0x174] ss:$8 sps:$4 sm:$0xff]   ;;  %v1587_v37 = vld [vmem:[#allocation5 + $0x70] ss:$8 sps:$4 sm:$0xff]   ;;  %v1598_v40 = vld [vmem:[#allocation5 + $0x164] ss:$8 sps:$4 sm:$0xff]  }
  0x38   :  { %v88_v36 = vld [vmem:[%s1981_s0] sm:$0xf]  ;;  %v1590_v38 = vld [vmem:[#allocation5 + $0x170] ss:$8 sps:$4 sm:$0xff]   ;;  %v1607_v47 = vld [vmem:[#allocation5 + $0x44] ss:$8 sps:$4 sm:$0xff]  }
  0x39   :  { %v1593_v41 = vld [vmem:[#allocation5 + $0x60] ss:$8 sps:$4 sm:$0xff]   ;;  %v1601_v43 = vld [vmem:[#allocation5 + $0x54] ss:$8 sps:$4 sm:$0xff]   ;;  %v1599_v45 = vld [vmem:[#allocation5 + $0x50] ss:$8 sps:$4 sm:$0xff]  }
  0x3a   :  { %310 = vmatpush1.bf16.msra.mxu0 %v1561_v16  ;;  %351 = vmatpush1.bf16.msra.mxu1 %v1562_v17  ;;  %v1596_v42 = vld [vmem:[#allocation5 + $0x160] ss:$8 sps:$4 sm:$0xff]   ;;  %v1604_v44 = vld [vmem:[#allocation5 + $0x154] ss:$8 sps:$4 sm:$0xff]   ;;  %v1602_v46 = vld [vmem:[#allocation5 + $0x150] ss:$8 sps:$4 sm:$0xff]  }
  0x3b   :  { %311 = vmatprep.subr.bf16.mxu0 %v1563_v18  ;;  %352 = vmatprep.subr.bf16.mxu1 %v1565_v19  ;;  %v1610_v48 = vld [vmem:[#allocation5 + $0x144] ss:$8 sps:$4 sm:$0xff]   ;;  %v1605_v49 = vld [vmem:[#allocation5 + $0x40] ss:$8 sps:$4 sm:$0xff]   ;;  %v1613_v51 = vld [vmem:[#allocation5 + $0x34] ss:$8 sps:$4 sm:$0xff]  }
  0x3c   :  { %v1608_v50 = vld [vmem:[#allocation5 + $0x140] ss:$8 sps:$4 sm:$0xff]   ;;  %v1616_v52 = vld [vmem:[#allocation5 + $0x134] ss:$8 sps:$4 sm:$0xff]   ;;  %v1611_v53 = vld [vmem:[#allocation5 + $0x30] ss:$8 sps:$4 sm:$0xff]  }
  0x3d   :  { %v1614_v54 = vld [vmem:[#allocation5 + $0x130] ss:$8 sps:$4 sm:$0xff]   ;;  %v1619_v55 = vld [vmem:[#allocation5 + $0x24] ss:$8 sps:$4 sm:$0xff]   ;;  %v1617_v57 = vld [vmem:[#allocation5 + $0x20] ss:$8 sps:$4 sm:$0xff]  }
  0x3e   :  { %312 = vmatpush1.bf16.msra.mxu0 %v1567_v20  ;;  %353 = vmatpush1.bf16.msra.mxu1 %v1568_v21  ;;  %v1622_v56 = vld [vmem:[#allocation5 + $0x124] ss:$8 sps:$4 sm:$0xff]   ;;  %v1620_v58 = vld [vmem:[#allocation5 + $0x120] ss:$8 sps:$4 sm:$0xff]   ;;  %v1625_v59 = vld [vmem:[#allocation5 + $0x14] ss:$8 sps:$4 sm:$0xff]  }
  0x3f   :  { %313 = vmatprep.subr.bf16.mxu0 %v1569_v22  ;;  %354 = vmatprep.subr.bf16.mxu1 %v1571_v23  ;;  %v1628_v60 = vld [vmem:[#allocation5 + $0x114] ss:$8 sps:$4 sm:$0xff]   ;;  %v1623_v61 = vld [vmem:[#allocation5 + $0x10] ss:$8 sps:$4 sm:$0xff]   ;;  %v1631_v63 = vld [vmem:[#allocation5 + $0x4] ss:$8 sps:$4 sm:$0xff]  }
  0x40   :  { %v1626_v62 = vld [vmem:[#allocation5 + $0x110] ss:$8 sps:$4 sm:$0xff]   ;;  %v1634_v0 = vld [vmem:[#allocation5 + $0x104] ss:$8 sps:$4 sm:$0xff]   ;;  %v1629_v1 = vld [vmem:[#allocation5] ss:$8 sps:$4 sm:$0xff]  }
  0x41   :  { %v1632_v2 = vld [vmem:[#allocation5 + $0x100] ss:$8 sps:$4 sm:$0xff]   ;;  %v1637_v3 = vld [vmem:[#allocation5 + $0xf4] ss:$8 sps:$4 sm:$0xff]   ;;  %v1635_v5 = vld [vmem:[#allocation5 + $0xf0] ss:$8 sps:$4 sm:$0xff]  }
  0x42   :  { %314 = vmatpush1.bf16.msra.mxu0 %v1573_v24  ;;  %355 = vmatpush1.bf16.msra.mxu1 %v1574_v25  ;;  %v1640_v4 = vld [vmem:[#allocation5 + $0x1f4] ss:$8 sps:$4 sm:$0xff]   ;;  %v1638_v6 = vld [vmem:[#allocation5 + $0x1f0] ss:$8 sps:$4 sm:$0xff]   ;;  %v1643_v7 = vld [vmem:[#allocation5 + $0xe4] ss:$8 sps:$4 sm:$0xff]  }
  0x43   :  { %315 = vmatprep.subr.bf16.mxu0 %v1575_v26  ;;  %356 = vmatprep.subr.bf16.mxu1 %v1577_v27  ;;  %v1646_v8 = vld [vmem:[#allocation5 + $0x1e4] ss:$8 sps:$4 sm:$0xff]   ;;  %v1641_v9 = vld [vmem:[#allocation5 + $0xe0] ss:$8 sps:$4 sm:$0xff]   ;;  %v1649_v11 = vld [vmem:[#allocation5 + $0xd4] ss:$8 sps:$4 sm:$0xff]  }
  0x44   :  { %v1644_v10 = vld [vmem:[#allocation5 + $0x1e0] ss:$8 sps:$4 sm:$0xff]   ;;  %v1652_v12 = vld [vmem:[#allocation5 + $0x1d4] ss:$8 sps:$4 sm:$0xff]   ;;  %v1647_v13 = vld [vmem:[#allocation5 + $0xd0] ss:$8 sps:$4 sm:$0xff]  }
  0x45   :  { %v1650_v14 = vld [vmem:[#allocation5 + $0x1d0] ss:$8 sps:$4 sm:$0xff]   ;;  %v1655_v15 = vld [vmem:[#allocation5 + $0xc4] ss:$8 sps:$4 sm:$0xff]   ;;  %v1653_v17 = vld [vmem:[#allocation5 + $0xc0] ss:$8 sps:$4 sm:$0xff]  }
  0x46   :  { %316 = vmatpush1.bf16.msra.mxu0 %v1579_v28  ;;  %357 = vmatpush1.bf16.msra.mxu1 %v1580_v29  ;;  %v1658_v16 = vld [vmem:[#allocation5 + $0x1c4] ss:$8 sps:$4 sm:$0xff]   ;;  %v1656_v18 = vld [vmem:[#allocation5 + $0x1c0] ss:$8 sps:$4 sm:$0xff]   ;;  %v1661_v19 = vld [vmem:[#allocation5 + $0xb4] ss:$8 sps:$4 sm:$0xff]  }
  0x47   :  { %317 = vmatprep.subr.bf16.mxu0 %v1581_v30  ;;  %358 = vmatprep.subr.bf16.mxu1 %v1583_v31  ;;  %v1664_v20 = vld [vmem:[#allocation5 + $0x1b4] ss:$8 sps:$4 sm:$0xff]   ;;  %v1659_v21 = vld [vmem:[#allocation5 + $0xb0] ss:$8 sps:$4 sm:$0xff]   ;;  %v1667_v23 = vld [vmem:[#allocation5 + $0xa4] ss:$8 sps:$4 sm:$0xff]  }
  0x48   :  { %v1662_v22 = vld [vmem:[#allocation5 + $0x1b0] ss:$8 sps:$4 sm:$0xff]   ;;  %v1670_v24 = vld [vmem:[#allocation5 + $0x1a4] ss:$8 sps:$4 sm:$0xff]   ;;  %v1665_v25 = vld [vmem:[#allocation5 + $0xa0] ss:$8 sps:$4 sm:$0xff]  }
  0x49   :  { %v1668_v26 = vld [vmem:[#allocation5 + $0x1a0] ss:$8 sps:$4 sm:$0xff]   ;;  %v1673_v27 = vld [vmem:[#allocation5 + $0x94] ss:$8 sps:$4 sm:$0xff]   ;;  %v1671_v29 = vld [vmem:[#allocation5 + $0x90] ss:$8 sps:$4 sm:$0xff]  }
  0x4a   :  { %318 = vmatpush1.bf16.msra.mxu0 %v1585_v32  ;;  %359 = vmatpush1.bf16.msra.mxu1 %v1586_v33  ;;  %v1676_v28 = vld [vmem:[#allocation5 + $0x194] ss:$8 sps:$4 sm:$0xff]   ;;  %v1674_v30 = vld [vmem:[#allocation5 + $0x190] ss:$8 sps:$4 sm:$0xff]   ;;  %v1679_v31 = vld [vmem:[#allocation5 + $0x84] ss:$8 sps:$4 sm:$0xff]  }
  0x4b   :  { %789 = vmatprep.subr.bf16.mxu0 %v1589_v34  ;;  %830 = vmatprep.subr.bf16.mxu1 %v1592_v35  ;;  %v1682_v32 = vld [vmem:[#allocation5 + $0x184] ss:$8 sps:$4 sm:$0xff]   ;;  %v1677_v33 = vld [vmem:[#allocation5 + $0x80] ss:$8 sps:$4 sm:$0xff]   ;;  %v1683_v35 = vld [vmem:[#allocation7 + $0x78] sm:$0xff]   ;;  %vm1288_vm1 = vcmask 523264  }
  0x4c   :  { %v1680_v34 = vld [vmem:[#allocation5 + $0x180] ss:$8 sps:$4 sm:$0xff]   ;;  %vm1305_vm2 = vcmask 7168  }
  0x4d   :  { %336 = vmatmul.mubr.bf16.vlgmr.msra.gmra.mxu0 %v88_v36  ;;  %377 = vmatmul.mubr.bf16.vlgmr.msra.gmra.mxu1 %v88_v36  ;;  %v123_v36 = vlaneseq }
  0x4e   :  { %790 = vmatpush1.bf16.msra.mxu0 %v1587_v37  ;;  %831 = vmatpush1.bf16.msra.mxu1 %v1590_v38 }
  0x4f   :  { %791 = vmatprep.subr.bf16.mxu0 %v1595_v39  ;;  %832 = vmatprep.subr.bf16.mxu1 %v1598_v40  ;;  %v1880_v37 = vshrl.u32 %v123_v36, 7  ;;  %v121_v40 = vld [vmem:[%s1983_s2] sm:$0xf] }
  0x51   :  { %v125_v38 = vsub.s32 0, %v1880_v37  ;;  %v133_v39 = vsub.s32 2, %v1880_v37 }
  0x52   :  { %792 = vmatpush1.bf16.msra.mxu0 %v1593_v41  ;;  %833 = vmatpush1.bf16.msra.mxu1 %v1596_v42  ;;  %v129_v41 = vsub.s32 1, %v1880_v37  ;;  %v137_v42 = vsub.s32 3, %v1880_v37  ;;  %v1704_v37 = vld [vmem:[%s1988_s7 + $0x10] sm:$0xff]  }
  0x53   :  { %793 = vmatprep.subr.bf16.mxu0 %v1601_v43  ;;  %834 = vmatprep.subr.bf16.mxu1 %v1604_v44  ;;  %v126_v43 = vrot.slane %v121_v40, %v125_v38  ;;  %v134_v44 = vrot.slane %v121_v40, %v133_v39 }
  0x56   :  { %794 = vmatpush1.bf16.msra.mxu0 %v1599_v45  ;;  %835 = vmatpush1.bf16.msra.mxu1 %v1602_v46  ;;  %v130_v45 = vrot.slane %v121_v40, %v129_v41  ;;  %v138_v46 = vrot.slane %v121_v40, %v137_v42 }
  0x57   :  { %795 = vmatprep.subr.bf16.mxu0 %v1607_v47  ;;  %836 = vmatprep.subr.bf16.mxu1 %v1610_v48 }
  0x5a   :  { %796 = vmatpush1.bf16.msra.mxu0 %v1605_v49  ;;  %837 = vmatpush1.bf16.msra.mxu1 %v1608_v50 }
  0x5b   :  { %797 = vmatprep.subr.bf16.mxu0 %v1613_v51  ;;  %838 = vmatprep.subr.bf16.mxu1 %v1616_v52 }
  0x5e   :  { %798 = vmatpush1.bf16.msra.mxu0 %v1611_v53  ;;  %839 = vmatpush1.bf16.msra.mxu1 %v1614_v54 }
  0x5f   :  { %799 = vmatprep.subr.bf16.mxu0 %v1619_v55  ;;  %840 = vmatprep.subr.bf16.mxu1 %v1622_v56 }
  0x62   :  { %800 = vmatpush1.bf16.msra.mxu0 %v1617_v57  ;;  %841 = vmatpush1.bf16.msra.mxu1 %v1620_v58 }
  0x63   :  { %801 = vmatprep.subr.bf16.mxu0 %v1625_v59  ;;  %842 = vmatprep.subr.bf16.mxu1 %v1628_v60 }
  0x66   :  { %802 = vmatpush1.bf16.msra.mxu0 %v1623_v61  ;;  %843 = vmatpush1.bf16.msra.mxu1 %v1626_v62 }
  0x67   :  { %803 = vmatprep.subr.bf16.mxu0 %v1631_v63  ;;  %844 = vmatprep.subr.bf16.mxu1 %v1634_v0 }
  0x6a   :  { %804 = vmatpush1.bf16.msra.mxu0 %v1629_v1  ;;  %845 = vmatpush1.bf16.msra.mxu1 %v1632_v2  ;;  %v1684_v2 = vld [vmem:[#allocation7 + $0x38] sm:$0xff]  }
  0x6b   :  { %805 = vmatprep.subr.bf16.mxu0 %v1637_v3  ;;  %846 = vmatprep.subr.bf16.mxu1 %v1640_v4  ;;  %v1685_v4 = vld [vmem:[#allocation7 + $0x70] sm:$0xff]  }
  0x6e   :  { %806 = vmatpush2.bf16.msra.mxu0 %v1635_v5  ;;  %847 = vmatpush2.bf16.msra.mxu1 %v1638_v6  ;;  %v1686_v5 = vld [vmem:[#allocation7 + $0x30] sm:$0xff]   ;;  %v1687_v6 = vld [vmem:[#allocation7 + $0x68] sm:$0xff]  }
  0x6f   :  { %807 = vmatprep.subr.bf16.mxu0 %v1643_v7  ;;  %848 = vmatprep.subr.bf16.mxu1 %v1646_v8  ;;  %v1688_v7 = vld [vmem:[#allocation7 + $0x28] sm:$0xff]   ;;  %v1689_v8 = vld [vmem:[#allocation7 + $0x60] sm:$0xff]  }
  0x72   :  { %808 = vmatpush2.bf16.msra.mxu0 %v1641_v9  ;;  %849 = vmatpush2.bf16.msra.mxu1 %v1644_v10  ;;  %v1690_v9 = vld [vmem:[#allocation7 + $0x20] sm:$0xff]   ;;  %v1691_v10 = vld [vmem:[#allocation7 + $0x58] sm:$0xff]  }
  0x73   :  { %809 = vmatprep.subr.bf16.mxu0 %v1649_v11  ;;  %850 = vmatprep.subr.bf16.mxu1 %v1652_v12  ;;  %v1692_v11 = vld [vmem:[#allocation7 + $0x18] sm:$0xff]   ;;  %v1693_v12 = vld [vmem:[#allocation7 + $0x50] sm:$0xff]  }
  0x76   :  { %810 = vmatpush2.bf16.msra.mxu0 %v1647_v13  ;;  %851 = vmatpush2.bf16.msra.mxu1 %v1650_v14  ;;  %v1694_v13 = vld [vmem:[#allocation7 + $0x10] sm:$0xff]   ;;  %v1695_v14 = vld [vmem:[#allocation7 + $0x48] sm:$0xff]  }
  0x77   :  { %811 = vmatprep.subr.bf16.mxu0 %v1655_v15  ;;  %852 = vmatprep.subr.bf16.mxu1 %v1658_v16  ;;  %v1696_v15 = vld [vmem:[#allocation7 + $0x8] sm:$0xff]   ;;  %v1697_v16 = vld [vmem:[#allocation7 + $0x40] sm:$0xff]  }
  0x7a   :  { %812 = vmatpush2.bf16.msra.mxu0 %v1653_v17  ;;  %853 = vmatpush2.bf16.msra.mxu1 %v1656_v18  ;;  %v1698_v17 = vld [vmem:[#allocation7] sm:$0xff]   ;;  %v1699_v18 = vld [vmem:[%s1988_s7 + $0x38] sm:$0xff]  }
  0x7b   :  { %813 = vmatprep.subr.bf16.mxu0 %v1661_v19  ;;  %854 = vmatprep.subr.bf16.mxu1 %v1664_v20  ;;  %v1793_v19 = vmov 0.0   ;;  %v1700_v20 = vld [vmem:[%s1988_s7 + $0x30] sm:$0xff]  }
  0x7e   :  { %814 = vmatpush2.bf16.msra.mxu0 %v1659_v21  ;;  %855 = vmatpush2.bf16.msra.mxu1 %v1662_v22  ;;  %v1701_v21 = vld [vmem:[%s1988_s7 + $0x28] sm:$0xff]   ;;  %v1702_v22 = vld [vmem:[%s1988_s7 + $0x20] sm:$0xff]  }
  0x7f   :  { %815 = vmatprep.subr.bf16.mxu0 %v1667_v23  ;;  %856 = vmatprep.subr.bf16.mxu1 %v1670_v24  ;;  %v1703_v23 = vld [vmem:[%s1988_s7 + $0x18] sm:$0xff]   ;;  %v457_v24 = vld [vmem:[%s1985_s4] sm:$0x3] }
  0x82   :  { %816 = vmatpush2.bf16.msra.mxu0 %v1665_v25  ;;  %857 = vmatpush2.bf16.msra.mxu1 %v1668_v26  ;;  %v462_v25 = vrot.slane %v457_v24, %v125_v38  ;;  %v466_v26 = vrot.slane %v457_v24, %v129_v41  ;;  %v1705_v38 = vld [vmem:[%s1988_s7 + $0x8] sm:$0xff]   ;;  %v1706_v41 = vld [vmem:[%s1988_s7] sm:$0xff]  }
  0x83   :  { %817 = vmatprep.subr.bf16.mxu0 %v1673_v27  ;;  %858 = vmatprep.subr.bf16.mxu1 %v1676_v28 }
  0x86   :  { %818 = vmatpush2.bf16.msra.mxu0 %v1671_v29  ;;  %859 = vmatpush2.bf16.msra.mxu1 %v1674_v30 }
  0x87   :  { %819 = vmatprep.subr.bf16.mxu0 %v1679_v31  ;;  %860 = vmatprep.subr.bf16.mxu1 %v1682_v32 }
  0x8a   :  { %820 = vmatpush2.bf16.msra.mxu0 %v1677_v33  ;;  %861 = vmatpush2.bf16.msra.mxu1 %v1680_v34 }
  0x8b   :  { %1447 = vmatprep.subr.bf16.mxu0 %v1683_v35  ;;  %1487 = vmatprep.subr.bf16.mxu1 %v1793_v19 }
 0x10d   :  { %v337_v47 = vpop.f32.mrf.mxu0  ;;  %v378_v48 = vpop.f32.mrf.mxu1 }
 0x10e   :  { %v338_v49 = vadd.f32 %v337_v47, %v126_v43  ;;  %v379_v50 = vadd.f32 %v378_v48, %v134_v44  ;;  %v1708_v47 = vld [vmem:[%s1990_s9 + $0x30] sm:$0xff]   ;;  %v1709_v48 = vld [vmem:[%s1990_s9 + $0x28] sm:$0xff]  }
 0x10f   :  { %v339_v51 = vpop.f32.mrf.mxu0  ;;  %v380_v52 = vpop.f32.mrf.mxu1 }
 0x110   :  { %v387_v53 = vmax.f32 %v379_v50, 0.0  ;;  %v340_v54 = vadd.f32 %v339_v51, %v130_v45  ;;  %v381_v55 = vadd.f32 %v380_v52, %v138_v46  ;;  %v385_v56 = vmax.f32 %v338_v49, 0.0  ;;  %v1707_v46 = vld [vmem:[%s1990_s9 + $0x38] sm:$0xff]   ;;  %v1710_v49 = vld [vmem:[%s1990_s9 + $0x20] sm:$0xff]   ;;  %v1712_v51 = vld [vmem:[%s1990_s9 + $0x10] sm:$0xff]  }
 0x111   :  { %v341_v57 = vpop.f32.mrf.mxu0  ;;  %v382_v58 = vpop.f32.mrf.mxu1  ;;  %v1711_v50 = vld [vmem:[%s1990_s9 + $0x18] sm:$0xff]  }
 0x112   :  { %v386_v59 = vmax.f32 %v340_v54, 0.0  ;;  %v388_v60 = vmax.f32 %v381_v55, 0.0  ;;  %v391_v61 = vpack.c.bf16 %v387_v53, %v387_v53  ;;  %v389_v3 = vpack.c.bf16 %v385_v56, %v385_v56  ;;  %v1409_v53 = vld [vmem:[%s1987_s6] ss:$0 sm:$0xff] }
 0x113   :  { %v342_v62 = vpop.f32.mrf.mxu0  ;;  %v383_v63 = vpop.f32.mrf.mxu1 }
 0x114   :  { %v390_v0 = vpack.c.bf16 %v386_v59, %v386_v59  ;;  %v392_v1 = vpack.c.bf16 %v388_v60, %v388_v60  ;;  %v1714_v62 = vld [vmem:[%s1990_s9] sm:$0xff]  }
 0x115   :  { %v1426_v63 = vld [vmem:[%s1989_s8] ss:$0 sm:$0xff] }
 0x116   :  { %821 = vmatprep.mubr.bf16.mxu0 %v390_v0  ;;  %862 = vmatprep.mubr.bf16.mxu1 %v392_v1 }
 0x117   :  { %822 = vmatmul.mubr.bf16.vlgmr.msra.gmra.mxu0 %v389_v3  ;;  %863 = vmatmul.mubr.bf16.vlgmr.msra.gmra.mxu1 %v391_v61  ;;  %v1713_v61 = vld [vmem:[%s1990_s9 + $0x8] sm:$0xff]  }
 0x118   :  { %1448 = vmatpush3.bf16.msra.mxu0 %v1684_v2  ;;  %1488 = vmatpush3.bf16.msra.mxu1 %v1699_v18 }
 0x119   :  { %1449 = vmatprep.subr.bf16.mxu0 %v1685_v4  ;;  %1489 = vmatprep.subr.bf16.mxu1 %v1793_v19 }
 0x11a   :  { %1503 = vmatprep.mubr.msk.bf16.mxu1 %vm1794_vm0, %v1793_v19 }
 0x11c   :  { %1450 = vmatpush3.bf16.msra.mxu0 %v1686_v5  ;;  %1490 = vmatpush3.bf16.msra.mxu1 %v1700_v20 }
 0x11d   :  { %1451 = vmatprep.subr.bf16.mxu0 %v1687_v6  ;;  %1491 = vmatprep.subr.bf16.mxu1 %v1793_v19 }
 0x120   :  { %1452 = vmatpush3.bf16.msra.mxu0 %v1688_v7  ;;  %1492 = vmatpush3.bf16.msra.mxu1 %v1701_v21  ;;  %v1435_v7 = vld [vmem:[%s1991_s10] ss:$0 sm:$0xff] }
 0x121   :  { %1453 = vmatprep.subr.bf16.mxu0 %v1689_v8  ;;  %1493 = vmatprep.subr.bf16.mxu1 %v1793_v19 }
 0x124   :  { %1454 = vmatpush3.bf16.msra.mxu0 %v1690_v9  ;;  %1494 = vmatpush3.bf16.msra.mxu1 %v1702_v22 }
 0x125   :  { %1455 = vmatprep.subr.bf16.mxu0 %v1691_v10  ;;  %1495 = vmatprep.subr.bf16.mxu1 %v1793_v19 }
 0x128   :  { %1456 = vmatpush3.bf16.msra.mxu0 %v1692_v11  ;;  %1496 = vmatpush3.bf16.msra.mxu1 %v1703_v23 }
 0x129   :  { %1457 = vmatprep.subr.bf16.mxu0 %v1693_v12  ;;  %1497 = vmatprep.subr.bf16.mxu1 %v1793_v19 }
 0x12c   :  { %1458 = vmatpush3.bf16.msra.mxu0 %v1694_v13  ;;  %1498 = vmatpush3.bf16.msra.mxu1 %v1704_v37 }
 0x12d   :  { %1459 = vmatprep.subr.bf16.mxu0 %v1695_v14  ;;  %1499 = vmatprep.subr.bf16.mxu1 %v1793_v19 }
 0x130   :  { %1460 = vmatpush3.bf16.msra.mxu0 %v1696_v15  ;;  %1500 = vmatpush3.bf16.msra.mxu1 %v1705_v38  ;;  %v1444_v15 = vld [vmem:[%s1992_s11] ss:$0 sm:$0xff] }
 0x131   :  { %1461 = vmatprep.subr.bf16.mxu0 %v1697_v16  ;;  %1501 = vmatprep.subr.bf16.mxu1 %v1793_v19 }
 0x134   :  { %1462 = vmatpush3.bf16.msra.mxu0 %v1698_v17  ;;  %1502 = vmatpush3.bf16.msra.mxu1 %v1706_v41 }
 0x135   :  { %1507 = vmatprep.subr.bf16.mxu0 %v1793_v19 }
 0x1d7   :  { %v823_v27 = vpop.f32.mrf.mxu0  ;;  %v864_v28 = vpop.f32.mrf.mxu1 }
 0x1d8   :  { %v824_v29 = vadd.f32 %v823_v27, %v462_v25 }
 0x1d9   :  { %v825_v30 = vpop.f32.mrf.mxu0  ;;  %v866_v31 = vpop.f32.mrf.mxu1 }
 0x1da   :  { %v865_v32 = vadd.f32 %v864_v28, %v824_v29  ;;  %v826_v33 = vadd.f32 %v825_v30, %v466_v26 }
 0x1db   :  { %v827_v34 = vpop.f32.mrf.mxu0  ;;  %v868_v35 = vpop.f32.mrf.mxu1 }
 0x1dc   :  { %v867_v36 = vadd.f32 %v866_v31, %v826_v33  ;;  %v871_v39 = vmax.f32 %v865_v32, 0.0 }
 0x1dd   :  { %v828_v40 = vpop.f32.mrf.mxu0  ;;  %v869_v42 = vpop.f32.mrf.mxu1 }
 0x1de   :  { %v872_v43 = vmax.f32 %v867_v36, 0.0  ;;  %v873_v45 = vpack.c.bf16 %v871_v39, %v871_v39 }
 0x1e0   :  { %v874_v44 = vpack.c.bf16 %v872_v43, %v872_v43 }
 0x1e2   :  { %1042 = vmatprep.mubr.bf16.mxu0 %v874_v44 }
 0x1e3   :  { %1043 = vmatmul.mubr.bf16.vlgmr.msra.gmra.mxu0 %v873_v45 }
 0x1e4   :  { %1523 = vmatprep.mubr.msk.bf16.mxu0 %vm1794_vm0, %v1793_v19  ;;  %1508 = vmatpush3.bf16.msra.mxu0 %v1707_v46 }
 0x1e5   :  { %1509 = vmatprep.subr.bf16.mxu0 %v1793_v19 }
 0x1e8   :  { %1510 = vmatpush3.bf16.msra.mxu0 %v1708_v47 }
 0x1e9   :  { %1511 = vmatprep.subr.bf16.mxu0 %v1793_v19 }
 0x1ec   :  { %1512 = vmatpush3.bf16.msra.mxu0 %v1709_v48 }
 0x1ed   :  { %1513 = vmatprep.subr.bf16.mxu0 %v1793_v19 }
 0x1f0   :  { %1514 = vmatpush3.bf16.msra.mxu0 %v1710_v49 }
 0x1f1   :  { %1515 = vmatprep.subr.bf16.mxu0 %v1793_v19 }
 0x1f4   :  { %1516 = vmatpush3.bf16.msra.mxu0 %v1711_v50 }
 0x1f5   :  { %1517 = vmatprep.subr.bf16.mxu0 %v1793_v19 }
 0x1f8   :  { %1518 = vmatpush3.bf16.msra.mxu0 %v1712_v51 }
 0x1f9   :  { %1519 = vmatprep.subr.bf16.mxu0 %v1793_v19 }
 0x1fc   :  { %1520 = vmatpush3.bf16.msra.mxu0 %v1713_v61 }
 0x1fd   :  { %1521 = vmatprep.subr.bf16.mxu0 %v1793_v19  ;;  %v1445_v19 = vld [vmem:[#allocation2] ss:$0 sm:$0xff] }
 0x200   :  { %1522 = vmatpush3.bf16.msra.mxu0 %v1714_v62 }
 0x2a3   :  { %v1463_v52 = vpop.f32.mrf.mxu0 }
 0x2a5   :  { %v1464_v54 = vpop.f32.mrf.mxu0 }
 0x2a6   :  { %v1465_v55 = vadd.f32 %v1464_v54, %v1463_v52 }
 0x2a7   :  { %v1466_v56 = vpop.f32.mrf.mxu0 }
 0x2a8   :  { %v1045_v57 = vadd.f32 %v1465_v55, %v1409_v53 }
 0x2a9   :  { %v1467_v58 = vpop.f32.mrf.mxu0 }
 0x2aa   :  { %v1050_v59 = vmax.f32 %v1045_v57, 0.0 }
 0x2ac   :  { %v1051_v60 = vpack.c.bf16 %v1050_v59, %v1050_v59 }
 0x2ae   :  { %1504 = vmatmul.mubr.bf16.vlgmr.msra.gmra.mxu1 %v1051_v60 }
 0x36e   :  { %v1157_v0 = vpop.f32.mrf.mxu1 }
 0x36f   :  { %v1158_v1 = vadd.f32 %v1426_v63, %v1157_v0 }
 0x370   :  { %v1505_v2 = vpop.f32.mrf.mxu1 }
 0x371   :  { %v1163_v3 = vmax.f32 %v1158_v1, 0.0 }
 0x372   :  { %v1160_v4 = vpop.f32.mrf.mxu1 }
 0x373   :  { %v1164_v5 = vpack.c.bf16 %v1163_v3, %v1163_v3 }
 0x374   :  { %v1506_v6 = vpop.f32.mrf.mxu1 }
 0x375   :  { %1524 = vmatmul.mubr.bf16.vlgmr.msra.gmra.mxu0 %v1164_v5 }
 0x435   :  { %v1270_v8 = vpop.f32.mrf.mxu0 }
 0x436   :  { %v1271_v9 = vadd.f32 %v1435_v7, %v1270_v8 }
 0x437   :  { %v1525_v10 = vpop.f32.mrf.mxu0 }
 0x438   :  { %v1276_v11 = vmax.f32 %v1271_v9, 0.0 }
 0x439   :  { %v1273_v12 = vpop.f32.mrf.mxu0 }
 0x43a   :  { %v1277_v13 = vpack.c.bf16 %v1276_v11, %v1276_v11 }
 0x43b   :  { %v1526_v14 = vpop.f32.mrf.mxu0 }
 0x43c   :  { %v1280_v16 = vunpack.c.l.bf16 %v1277_v13 }
 0x43e   :  { %v1287_v17 = vmul.f32 %v1444_v15, %v1280_v16 }
 0x440   :  { %v1289_v18 = vsel %vm1288_vm1, %v1287_v17, 0.0 }
 0x441   :  { %1290 = vadd.xlane.f32.xlu0 %v1289_v18 }
 0x4ca   :  { %v1291_v20 = vpop.xlane.xlu0 %1290 }
 0x4cb   :  { %v1298_v21 = vadd.f32 %v1445_v19, %v1291_v20 }
 0x4cd   :  { %v1446_v22 = vmul.f32 -1.442695, %v1298_v21 }
 0x4cf   :  { %1715 = vpow2.f32 %v1446_v22 }
 0x4dc   :  { %v1716_v23 = vpop.eup %1715 }
 0x4dd   :  { %v1302_v24 = vadd.f32 1.0, %v1716_v23 }
 0x4df   :  { %1717 = vrcp.f32 %v1302_v24 }
 0x4ec   :  { %v1718_v25 = vpop.eup %1717 }
 0x4ed   :  { %1306 = vst.msk [vmem:[%s1994_s13] sm:$0xff] %vm1305_vm2, %v1718_v25 }
 0x4ee   :  { %1311 = vsyncpa [#allocation4], 1 }
 0x4ef   :  { %1312 = vsyncpa [#allocation6], 1 }

</bundles_post_ra>
